<compile_context>
chip_gen: v5e
topology: v5e:2x2
jax: 0.10.0
libtpu: 0.0.40
codegen_flags: <defaults>
</compile_context>

<pallas_src>
import math
from functools import partial

import jax
import jax.numpy as jnp
from jax.experimental import pallas as pl
from jax.experimental.pallas import tpu as pltpu

NINP = 4 * (128 + 4 + 6)  # 552
_LANE = 128
_MAX_TM = 512             # MXU-friendly M tile; ~8.5 MiB VMEM working set


def _round_up(x, m):
    return ((x + m - 1) // m) * m


def _gemm_bias_kernel(x_ref, w_ref, b_ref, o_ref):
    # x_ref: (TM, Kp) bf16   w_ref: (Kp, Np) bf16   b_ref: (1, Np) f32   o_ref: (TM, Np) f32
    acc = jnp.dot(x_ref[...], w_ref[...], preferred_element_type=jnp.float32)
    o_ref[...] = (acc + b_ref[...]).astype(o_ref.dtype)


def _pairwise_conv_gemm(x2k, w_flat_t, bias_row):
    """x2k: (M, Kp) bf16, w_flat_t: (Kp, Np) bf16, bias_row: (1, Np) f32 -> (M, Np) f32."""
    M, K = x2k.shape
    N = w_flat_t.shape[1]
    TM = min(_MAX_TM, _round_up(max(M, 1), 8))   # big MXU-friendly tile, clamped to M
    grid_m = pl.cdiv(M, TM)                       # partial last block is masked on store

    cost = pl.CostEstimate(
        flops=2 * M * K * N,
        transcendentals=0,
        bytes_accessed=M * K * 2 + K * N * 2 + M * N * 4,
    )

    return pl.pallas_call(
        _gemm_bias_kernel,
        out_shape=jax.ShapeDtypeStruct((M, N), jnp.float32),
        grid_spec=pltpu.PrefetchScalarGridSpec(
            num_scalar_prefetch=0,
            grid=(grid_m,),
            in_specs=[
                pl.BlockSpec((TM, K), lambda i: (i, 0)),   # pair-stacked activations
                pl.BlockSpec((K, N), lambda i: (0, 0)),    # resident GEMM weight
                pl.BlockSpec((1, N), lambda i: (0, 0)),    # resident bias row
            ],
            out_specs=pl.BlockSpec((TM, N), lambda i: (i, 0)),
        ),
        compiler_params=pltpu.CompilerParams(
            dimension_semantics=("parallel",),
        ),
        cost_estimate=cost,
    )(x2k, w_flat_t, bias_row)


@partial(jax.jit, static_argnames=("target_seqlen",))
def _forward(x, w_flat_t, bias_row, target_seqlen):
    B, L, C = x.shape
    c_pad = w_flat_t.shape[0] // 2

    # Conv1d(k=2, s=2) output length after right-padding the seq dim to 2*target_seqlen.
    l_pad = L + max(0, 2 * target_seqlen - L)
    if l_pad < 2:
        raise ValueError("padded sequence length must be >= kernel_size (2)")
    t_out = (l_pad - 2) // 2 + 1
    l_use = 2 * t_out

    # One fused pad/cast pass: bf16 cast, seq pad (or slice), feature pad to lane multiple.
    xb = x.astype(jnp.bfloat16)
    if l_use <= L:
        xb = xb[:, :l_use, :]
        xb = jnp.pad(xb, ((0, 0), (0, 0), (0, c_pad - C)))
    else:
        xb = jnp.pad(xb, ((0, 0), (0, l_use - L), (0, c_pad - C)))

    # Pair-stack along the feature dim — a pure view of the contiguous (B, 2*t_out, c_pad).
    x2k = xb.reshape(B * t_out, 2 * c_pad)

    out = _pairwise_conv_gemm(x2k, w_flat_t, bias_row)      # (B*t_out, n_pad) f32
    return out[:, :C].reshape(B, t_out, C)


class DimensionCompressionLayerPallas:
    def __init__(self, kernel_size=2, stride=2, feature_dim=NINP, key=None):
        assert kernel_size == 2 and stride == 2, "kernel implements the k=2, s=2 case"
        self.kernel_size = kernel_size
        self.stride = stride
        self.feature_dim = feature_dim
        if key is None:
            key = jax.random.PRNGKey(0)
        kw, kb = jax.random.split(key)
        fan_in = feature_dim * kernel_size
        bound = 1.0 / math.sqrt(fan_in)  # PyTorch Conv1d default init range
        # Conv1d weight: (out_channels, in_channels, kernel_size)
        self.weight = jax.random.uniform(
            kw, (feature_dim, feature_dim, kernel_size),
            minval=-bound, maxval=bound, dtype=jnp.float32)
        self.bias = jax.random.uniform(
            kb, (feature_dim,), minval=-bound, maxval=bound, dtype=jnp.float32)

        # One-time padded GEMM form (lane-dense K and N):
        #   W_flat[k*c_pad + c_in, c_out] = weight[c_out, c_in, k], zero elsewhere.
        c_pad = _round_up(feature_dim, _LANE)
        n_pad = _round_up(feature_dim, _LANE)
        w_kic = jnp.transpose(self.weight, (2, 1, 0))        # (k, c_in, c_out)
        w_flat = jnp.zeros((2 * c_pad, n_pad), jnp.float32)
        w_flat = w_flat.at[:feature_dim, :feature_dim].set(w_kic[0])
        w_flat = w_flat.at[c_pad:c_pad + feature_dim, :feature_dim].set(w_kic[1])
        self._w_flat_t = w_flat.astype(jnp.bfloat16)         # (2*c_pad, n_pad) bf16
        self._bias_row = (jnp.zeros((1, n_pad), jnp.float32)
                          .at[0, :feature_dim].set(self.bias))

    def __call__(self, target_seqlen, x):
        assert x.shape[-1] == self.feature_dim
        return _forward(x, self._w_flat_t, self._bias_row, int(target_seqlen))


def _reference_f32(layer, target_seqlen, x):
    """Pure-JAX f32 reference of the Conv1d(k=2, s=2) forward (PyTorch semantics)."""
    B, L, C = x.shape
    pad_len = max(0, 2 * target_seqlen - L)
    x_pad = jnp.pad(x, ((0, 0), (0, pad_len), (0, 0)))
    Lp = L + pad_len
    T = (Lp - 2) // 2 + 1
    xp = x_pad[:, : 2 * T, :].reshape(B, T, 2, C)
    return jnp.einsum("btki,oik->bto", xp, layer.weight) + layer.bias


def _reference_bf16(layer, target_seqlen, x):
    """Reference with the same bf16-input / f32-accumulate numerics as the kernel."""
    B, L, C = x.shape
    pad_len = max(0, 2 * target_seqlen - L)
    x_pad = jnp.pad(x, ((0, 0), (0, pad_len), (0, 0)))
    Lp = L + pad_len
    T = (Lp - 2) // 2 + 1
    xp = x_pad[:, : 2 * T, :].reshape(B, T, 2, C).astype(jnp.bfloat16)
    w = jnp.transpose(layer.weight, (2, 1, 0)).astype(jnp.bfloat16)   # (k, i, o)
    out = jnp.einsum("btki,kio->bto",
                     xp.astype(jnp.float32), w.astype(jnp.float32))
    return out + layer.bias


if __name__ == "__main__":
    key = jax.random.PRNGKey(0)
    k_param, k_x = jax.random.split(key)

    layer = DimensionCompressionLayerPallas(kernel_size=2, stride=2,
                                            feature_dim=NINP, key=k_param)

    B, L = 2, 12
    target_seqlen = 8
    x = jax.random.normal(k_x, (B, L, NINP), dtype=jnp.float32)

    out = jax.block_until_ready(layer(target_seqlen, x))
    assert out.shape == (B, target_seqlen, NINP), out.shape

    # Tight check against a bf16-consistent reference (validates the kernel math).
    ref_bf16 = jax.block_until_ready(_reference_bf16(layer, target_seqlen, x))
    assert jnp.allclose(out, ref_bf16, atol=2e-3, rtol=2e-3), float(
        jnp.max(jnp.abs(out - ref_bf16)))

    # Loose check against the f32 PyTorch-equivalent reference (bf16 MXU rounding).
    ref_f32 = jax.block_until_ready(_reference_f32(layer, target_seqlen, x))
    assert jnp.allclose(out, ref_f32, atol=5e-2, rtol=5e-2), float(
        jnp.max(jnp.abs(out - ref_f32)))

    # Also exercise the "no padding needed" branch (L > 2*target_seqlen, odd L).
    x2 = jax.random.normal(jax.random.PRNGKey(3), (B, 19, NINP), dtype=jnp.float32)
    out2 = jax.block_until_ready(layer(4, x2))
    ref2 = jax.block_until_ready(_reference_f32(layer, 4, x2))
    assert out2.shape == ref2.shape == (B, 9, NINP), (out2.shape, ref2.shape)
    assert jnp.allclose(out2, ref2, atol=5e-2, rtol=5e-2), float(
        jnp.max(jnp.abs(out2 - ref2)))

    print("KERNEL_OK")
</pallas_src>

<mosaic_0001>
module attributes {stable_mosaic.version = 11 : i64} {
  func.func @_gemm_bias_kernel(%arg0: i32, %arg1: memref<16x1280xbf16, #tpu.memory_space<vmem>>, %arg2: memref<1280x640xbf16, #tpu.memory_space<vmem>>, %arg3: memref<1x640xf32, #tpu.memory_space<vmem>>, %arg4: memref<16x640xf32, #tpu.memory_space<vmem>>) attributes {dimension_semantics = [#tpu.dimension_semantics<parallel>], iteration_bounds = array<i64: 1>, scalar_prefetch = 0 : i64, scratch_operands = 0 : i64, tpu.core_type = #tpu.core_type<tc>, window_params = [{transform_indices = @transform_0, window_bounds = array<i64: 16, 1280>}, {pipeline_mode = #tpu.pipeline_mode<synchronous>, transform_indices = @transform_1, window_bounds = array<i64: 1280, 640>}, {pipeline_mode = #tpu.pipeline_mode<synchronous>, transform_indices = @transform_2, window_bounds = array<i64: 1, 640>}, {transform_indices = @transform_3, window_bounds = array<i64: 16, 640>}]} {
    %c0 = arith.constant 0 : index
    %c0_0 = arith.constant 0 : index
    %0 = vector.load %arg1[%c0, %c0_0] : memref<16x1280xbf16, #tpu.memory_space<vmem>>, vector<16x1280xbf16>
    %c0_1 = arith.constant 0 : index
    %c0_2 = arith.constant 0 : index
    %1 = vector.load %arg2[%c0_1, %c0_2] : memref<1280x640xbf16, #tpu.memory_space<vmem>>, vector<1280x640xbf16>
    %cst = arith.constant dense<0.000000e+00> : vector<16x640xf32>
    %2 = tpu.matmul %0, %1, %cst {dimension_numbers = #tpu.dot_dimension_numbers<[1], [0], [0], [1], [0, 0, 1, 1], [], []>} : vector<16x1280xbf16>, vector<1280x640xbf16>, vector<16x640xf32> -> vector<16x640xf32>
    %c0_3 = arith.constant 0 : index
    %c0_4 = arith.constant 0 : index
    %3 = vector.load %arg3[%c0_3, %c0_4] : memref<1x640xf32, #tpu.memory_space<vmem>>, vector<1x640xf32>
    %4 = vector.broadcast %3 : vector<1x640xf32> to vector<16x640xf32>
    %5 = arith.addf %2, %4 : vector<16x640xf32>
    %c0_5 = arith.constant 0 : index
    %c0_6 = arith.constant 0 : index
    %6 = vector.load %arg4[%c0_5, %c0_6] : memref<16x640xf32, #tpu.memory_space<vmem>>, vector<16x640xf32>
    tpu.vector_store %arg4[%c0_5, %c0_6], %5 {strides = array<i32>} : memref<16x640xf32, #tpu.memory_space<vmem>>, vector<16x640xf32>,
    return
  }
  func.func @transform_0(%arg0: i32) -> (i32, i32) {
    %c0_i32 = arith.constant 0 : i32
    %c0_i32_0 = arith.constant 0 : i32
    return %arg0, %c0_i32 : i32, i32
  }
  func.func @transform_1(%arg0: i32) -> (i32, i32) {
    %c0_i32 = arith.constant 0 : i32
    %c0_i32_0 = arith.constant 0 : i32
    %c0_i32_1 = arith.constant 0 : i32
    return %c0_i32, %c0_i32_0 : i32, i32
  }
  func.func @transform_2(%arg0: i32) -> (i32, i32) {
    %c0_i32 = arith.constant 0 : i32
    %c0_i32_0 = arith.constant 0 : i32
    %c0_i32_1 = arith.constant 0 : i32
    return %c0_i32, %c0_i32_0 : i32, i32
  }
  func.func @transform_3(%arg0: i32) -> (i32, i32) {
    %c0_i32 = arith.constant 0 : i32
    %c0_i32_0 = arith.constant 0 : i32
    return %arg0, %c0_i32 : i32, i32
  }
}

</mosaic_0001>

<bundles_post_ra>
// kernel: _forward.1
= control target key start
LH: loop header
LB: loop body
LE: loop exit
PB: predicated region body
PF: predicated region fallthrough
CT: control target
= control target key end

     0   :  { %8 = vsyncpa [#allocation3], 0  ;;  %s5719_s0 = inlined_call_operand.vmem [shape: bf16[16,1280], index: 0, kind: input, shape index: {}]   ;;  %s5720_s1 = inlined_call_operand.hbm [shape: bf16[1280,640], index: 1, kind: input, shape index: {}]   ;;  %s5721_s2 = inlined_call_operand.hbm [shape: f32[1,640], index: 2, kind: input, shape index: {}]   ;;  %s5722_s3 = inlined_call_operand.vmem [shape: f32[16,640], index: 3, kind: output, shape index: {}]  }
   0x1   :  { %s16_s14 = sshll.u32 %s5720_s1, 4  ;;  %s17_s14 = int_to_ptr.hbm [resolvable:$true] %s16_s14 }
   0x2   :  { %9 = vsyncpa [#allocation5], 0  ;;  %s5499_s15 = smov [#allocation2]   ;;  %s30_s19 = sshll.u32 %s5721_s2, 4  ;;  %s31_s19 = int_to_ptr.hbm [resolvable:$true] %s30_s19 }
   0x3   :  { %s18_s16 = sshll.u32 %s5499_s15, 4  ;;  %s5500_s20 = smov 320   ;;  %s19_s16 = int_to_ptr.vmem [resolvable:$true] %s18_s16 }
   0x4   :  { %s5501_s21 = smov 20   ;;  %s5502_s22 = smov [#allocation4]  }
   0x5   :  { %24 = dma.hbm_to_vmem [thread:$0]  %s17_s14, 51200, %s19_s16, [#allocation3], %s5500_s20, %s5500_s20, %s5501_s21  }
   0x6   :  { %s32_s23 = sshll.u32 %s5502_s22, 4  ;;  %s33_s23 = int_to_ptr.vmem [resolvable:$true] %s32_s23 }
   0x7   :  { %35 = dma.hbm_to_vmem [thread:$0]  %s31_s19, 80, %s33_s23, [#allocation5]  }
   0x8   :  { %5495 = dma.done.wait [#allocation3], 51200  }
   0x9   :  { %5496 = vsyncadd [#allocation3], 4294916096 }
   0xa   :  { %5497 = dma.done.wait [#allocation5], 80  }
   0xb   :  { %5498 = vsyncadd [#allocation5], 4294967216  ;;  %v3574_v0 = vld [vmem:[#allocation2 + $0x118] sm:$0xf]  ;;  %v5079_v1 = vld [vmem:[#allocation2 + $0x128] sm:$0xf0] }
   0xc   :  { %v3734_v2 = vld [vmem:[#allocation2 + $0x258] sm:$0xf]  ;;  %v3575_v3 = vor.u32 %v5079_v1, %v3574_v0  ;;  %v5119_v4 = vld [vmem:[#allocation2 + $0x268] sm:$0xf0]  ;;  %v3554_v11 = vld [vmem:[#allocation2 + $0xf0] sm:$0xf] }
   0xd   :  { %v3894_v5 = vld [vmem:[#allocation2 + $0x398] sm:$0xf]  ;;  %v5159_v6 = vld [vmem:[#allocation2 + $0x3a8] sm:$0xf0]  ;;  %v3735_v7 = vor.u32 %v5119_v4, %v3734_v2  ;;  %v5074_v13 = vld [vmem:[#allocation2 + $0x100] sm:$0xf0] }
   0xe   :  { %v3895_v8 = vor.u32 %v5159_v6, %v3894_v5  ;;  %v4054_v9 = vld [vmem:[#allocation2 + $0x4d8] sm:$0xf]  ;;  %v5199_v10 = vld [vmem:[#allocation2 + $0x4e8] sm:$0xf0]  ;;  %2676 = vmatpush.bf16.msra.mxu0 %v3575_v3  ;;  %v3714_v14 = vld [vmem:[#allocation2 + $0x230] sm:$0xf]  ;;  %v3555_v16 = vor.u32 %v5074_v13, %v3554_v11 }
   0xf   :  { %v4055_v12 = vor.u32 %v5199_v10, %v4054_v9  ;;  %v5114_v15 = vld [vmem:[#allocation2 + $0x240] sm:$0xf0]  ;;  %2690 = vmatpush.bf16.msra.mxu1 %v3735_v7  ;;  %v3874_v18 = vld [vmem:[#allocation2 + $0x370] sm:$0xf]  ;;  %v3534_v23 = vld [vmem:[#allocation2 + $0xc8] sm:$0xf] }
  0x10   :  { %2704 = vmatpush.bf16.msra.mxu2 %v3895_v8  ;;  %v3715_v17 = vor.u32 %v5114_v15, %v3714_v14  ;;  %v5154_v19 = vld [vmem:[#allocation2 + $0x380] sm:$0xf0]  ;;  %v4034_v20 = vld [vmem:[#allocation2 + $0x4b0] sm:$0xf]  ;;  %v5069_v24 = vld [vmem:[#allocation2 + $0xd8] sm:$0xf0] }
  0x11   :  { %2718 = vmatpush.bf16.msra.mxu3 %v4055_v12  ;;  %v3875_v21 = vor.u32 %v5154_v19, %v3874_v18  ;;  %v5194_v22 = vld [vmem:[#allocation2 + $0x4c0] sm:$0xf0]  ;;  %v3694_v26 = vld [vmem:[#allocation2 + $0x208] sm:$0xf]  ;;  %v5109_v27 = vld [vmem:[#allocation2 + $0x218] sm:$0xf0]  ;;  %v3535_v29 = vor.u32 %v5069_v24, %v3534_v23 }
  0x12   :  { %v4035_v25 = vor.u32 %v5194_v22, %v4034_v20  ;;  %v3854_v28 = vld [vmem:[#allocation2 + $0x348] sm:$0xf]  ;;  %2677 = vmatpush.bf16.msra.mxu0 %v3555_v16  ;;  %v5149_v30 = vld [vmem:[#allocation2 + $0x358] sm:$0xf0]  ;;  %v3695_v33 = vor.u32 %v5109_v27, %v3694_v26  ;;  %v3514_v35 = vld [vmem:[#allocation2 + $0xa0] sm:$0xf] }
  0x13   :  { %v4014_v31 = vld [vmem:[#allocation2 + $0x488] sm:$0xf]  ;;  %v5189_v32 = vld [vmem:[#allocation2 + $0x498] sm:$0xf0]  ;;  %2691 = vmatpush.bf16.msra.mxu1 %v3715_v17  ;;  %v3855_v34 = vor.u32 %v5149_v30, %v3854_v28  ;;  %v5064_v36 = vld [vmem:[#allocation2 + $0xb0] sm:$0xf0] }
  0x14   :  { %2705 = vmatpush.bf16.msra.mxu2 %v3875_v21  ;;  %v3674_v37 = vld [vmem:[#allocation2 + $0x1e0] sm:$0xf]  ;;  %v4015_v38 = vor.u32 %v5189_v32, %v4014_v31  ;;  %v5104_v39 = vld [vmem:[#allocation2 + $0x1f0] sm:$0xf0]  ;;  %v3515_v44 = vor.u32 %v5064_v36, %v3514_v35  ;;  %v3494_v47 = vld [vmem:[#allocation2 + $0x78] sm:$0xf] }
  0x15   :  { %2719 = vmatpush.bf16.msra.mxu3 %v4035_v25  ;;  %v3834_v40 = vld [vmem:[#allocation2 + $0x320] sm:$0xf]  ;;  %v5144_v41 = vld [vmem:[#allocation2 + $0x330] sm:$0xf0]  ;;  %v3675_v45 = vor.u32 %v5104_v39, %v3674_v37  ;;  %v5059_v48 = vld [vmem:[#allocation2 + $0x88] sm:$0xf0] }
  0x16   :  { %v3994_v42 = vld [vmem:[#allocation2 + $0x460] sm:$0xf]  ;;  %v5184_v43 = vld [vmem:[#allocation2 + $0x470] sm:$0xf0]  ;;  %2678 = vmatpush.bf16.msra.mxu0 %v3535_v29  ;;  %v3835_v46 = vor.u32 %v5144_v41, %v3834_v40  ;;  %v3654_v49 = vld [vmem:[#allocation2 + $0x1b8] sm:$0xf]  ;;  %v3495_v56 = vor.u32 %v5059_v48, %v3494_v47 }
  0x17   :  { %2692 = vmatpush.bf16.msra.mxu1 %v3695_v33  ;;  %v3995_v50 = vor.u32 %v5184_v43, %v3994_v42  ;;  %v5099_v51 = vld [vmem:[#allocation2 + $0x1c8] sm:$0xf0]  ;;  %v3814_v52 = vld [vmem:[#allocation2 + $0x2f8] sm:$0xf]  ;;  %v3474_v59 = vld [vmem:[#allocation2 + $0x50] sm:$0xf] }
  0x18   :  { %2706 = vmatpush.bf16.msra.mxu2 %v3855_v34  ;;  %v5139_v53 = vld [vmem:[#allocation2 + $0x308] sm:$0xf0]  ;;  %v3974_v54 = vld [vmem:[#allocation2 + $0x438] sm:$0xf]  ;;  %v3655_v57 = vor.u32 %v5099_v51, %v3654_v49  ;;  %v5054_v60 = vld [vmem:[#allocation2 + $0x60] sm:$0xf0] }
  0x19   :  { %2720 = vmatpush.bf16.msra.mxu3 %v4015_v38  ;;  %v5179_v55 = vld [vmem:[#allocation2 + $0x448] sm:$0xf0]  ;;  %v3815_v58 = vor.u32 %v5139_v53, %v3814_v52  ;;  %v3634_v61 = vld [vmem:[#allocation2 + $0x190] sm:$0xf]  ;;  %v5094_v63 = vld [vmem:[#allocation2 + $0x1a0] sm:$0xf0]  ;;  %v3475_v4 = vor.u32 %v5054_v60, %v3474_v59 }
  0x1a   :  { %2679 = vmatpush.bf16.msra.mxu0 %v3515_v44  ;;  %v3975_v62 = vor.u32 %v5179_v55, %v3974_v54  ;;  %v3794_v0 = vld [vmem:[#allocation2 + $0x2d0] sm:$0xf]  ;;  %v5134_v1 = vld [vmem:[#allocation2 + $0x2e0] sm:$0xf0]  ;;  %v3635_v5 = vor.u32 %v5094_v63, %v3634_v61  ;;  %v3454_v7 = vld [vmem:[#allocation2 + $0x28] sm:$0xf] }
  0x1b   :  { %2693 = vmatpush.bf16.msra.mxu1 %v3675_v45  ;;  %v3954_v2 = vld [vmem:[#allocation2 + $0x410] sm:$0xf]  ;;  %v5174_v3 = vld [vmem:[#allocation2 + $0x420] sm:$0xf0]  ;;  %v3795_v6 = vor.u32 %v5134_v1, %v3794_v0  ;;  %v5049_v8 = vld [vmem:[#allocation2 + $0x38] sm:$0xf0] }
  0x1c   :  { %2707 = vmatpush.bf16.msra.mxu2 %v3835_v46  ;;  %v3614_v9 = vld [vmem:[#allocation2 + $0x168] sm:$0xf]  ;;  %v3955_v10 = vor.u32 %v5174_v3, %v3954_v2  ;;  %v5089_v11 = vld [vmem:[#allocation2 + $0x178] sm:$0xf0]  ;;  %v3455_v16 = vor.u32 %v5049_v8, %v3454_v7  ;;  %v3434_v17 = vld [vmem:[#allocation2] sm:$0xf] }
  0x1d   :  { %2721 = vmatpush.bf16.msra.mxu3 %v3995_v50  ;;  %v3774_v12 = vld [vmem:[#allocation2 + $0x2a8] sm:$0xf]  ;;  %v5129_v13 = vld [vmem:[#allocation2 + $0x2b8] sm:$0xf0]  ;;  %v5044_v18 = vld [vmem:[#allocation2 + $0x10] sm:$0xf0]  ;;  %v3615_v19 = vor.u32 %v5089_v11, %v3614_v9 }
  0x1e   :  { %2680 = vmatpush.bf16.msra.mxu0 %v3495_v56  ;;  %v3934_v14 = vld [vmem:[#allocation2 + $0x3e8] sm:$0xf]  ;;  %v5169_v15 = vld [vmem:[#allocation2 + $0x3f8] sm:$0xf0]  ;;  %v3775_v20 = vor.u32 %v5129_v13, %v3774_v12  ;;  %v3594_v21 = vld [vmem:[#allocation2 + $0x140] sm:$0xf]  ;;  %v3435_v31 = vor.u32 %v5044_v18, %v3434_v17 }
  0x1f   :  { %2694 = vmatpush.bf16.msra.mxu1 %v3655_v57  ;;  %v5084_v22 = vld [vmem:[#allocation2 + $0x150] sm:$0xf0]  ;;  %v3754_v23 = vld [vmem:[#allocation2 + $0x280] sm:$0xf]  ;;  %v3935_v24 = vor.u32 %v5169_v15, %v3934_v14  ;;  %v4214_v26 = vld [vmem:[#allocation2 + $0x618] sm:$0xf] }
  0x20   :  { %2708 = vmatpush.bf16.msra.mxu2 %v3815_v58  ;;  %v5124_v25 = vld [vmem:[#allocation2 + $0x290] sm:$0xf0]  ;;  %v5239_v27 = vld [vmem:[#allocation2 + $0x628] sm:$0xf0]  ;;  %v4374_v28 = vld [vmem:[#allocation2 + $0x758] sm:$0xf]  ;;  %v3595_v35 = vor.u32 %v5084_v22, %v3594_v21 }
  0x21   :  { %2722 = vmatpush.bf16.msra.mxu3 %v3975_v62  ;;  %v5279_v29 = vld [vmem:[#allocation2 + $0x768] sm:$0xf0]  ;;  %v4534_v30 = vld [vmem:[#allocation2 + $0x898] sm:$0xf]  ;;  %v3914_v33 = vld [vmem:[#allocation2 + $0x3c0] sm:$0xf]  ;;  %v3755_v36 = vor.u32 %v5124_v25, %v3754_v23  ;;  %v4215_v39 = vor.u32 %v5239_v27, %v4214_v26 }
  0x22   :  { %2681 = vmatpush.bf16.msra.mxu0 %v3475_v4  ;;  %v5319_v32 = vld [vmem:[#allocation2 + $0x8a8] sm:$0xf0]  ;;  %v5164_v34 = vld [vmem:[#allocation2 + $0x3d0] sm:$0xf0]  ;;  %v4694_v37 = vld [vmem:[#allocation2 + $0x9d8] sm:$0xf]  ;;  %v4375_v40 = vor.u32 %v5279_v29, %v4374_v28 }
  0x23   :  { %2695 = vmatpush.bf16.msra.mxu1 %v3635_v5  ;;  %v5359_v38 = vld [vmem:[#allocation2 + $0x9e8] sm:$0xf0]  ;;  %v4194_v41 = vld [vmem:[#allocation2 + $0x5f0] sm:$0xf]  ;;  %v5234_v42 = vld [vmem:[#allocation2 + $0x600] sm:$0xf0]  ;;  %v4535_v43 = vor.u32 %v5319_v32, %v4534_v30  ;;  %v3915_v44 = vor.u32 %v5164_v34, %v3914_v33 }
  0x24   :  { %2709 = vmatpush.bf16.msra.mxu2 %v3795_v6  ;;  %v4354_v45 = vld [vmem:[#allocation2 + $0x730] sm:$0xf]  ;;  %v5274_v46 = vld [vmem:[#allocation2 + $0x740] sm:$0xf0]  ;;  %v4695_v48 = vor.u32 %v5359_v38, %v4694_v37  ;;  %v4174_v52 = vld [vmem:[#allocation2 + $0x5c8] sm:$0xf]  ;;  %v4195_v56 = vor.u32 %v5234_v42, %v4194_v41 }
  0x25   :  { %2723 = vmatpush.bf16.msra.mxu3 %v3955_v10  ;;  %v4514_v47 = vld [vmem:[#allocation2 + $0x870] sm:$0xf]  ;;  %v5314_v49 = vld [vmem:[#allocation2 + $0x880] sm:$0xf0]  ;;  %v3394_v53 = vld [vmem:[%s5719_s0] sm:$0xf]  ;;  %v4355_v57 = vor.u32 %v5274_v46, %v4354_v45 }
  0x26   :  { %2682 = vmatpush.bf16.msra.mxu0 %v3455_v16  ;;  %v4674_v50 = vld [vmem:[#allocation2 + $0x9b0] sm:$0xf]  ;;  %v5354_v51 = vld [vmem:[#allocation2 + $0x9c0] sm:$0xf0]  ;;  %v5037_v54 = vld [vmem:[%s5719_s0 + $0x24] sm:$0xf0]  ;;  %v4515_v62 = vor.u32 %v5314_v49, %v4514_v47 }
  0x27   :  { %2696 = vmatpush.bf16.msra.mxu1 %v3615_v19  ;;  %v3402_v55 = vld [vmem:[%s5719_s0 + $0x8] sm:$0xf]  ;;  %v5229_v58 = vld [vmem:[#allocation2 + $0x5d8] sm:$0xf0]  ;;  %v5538_v60 = vor.u32 %v5037_v54, %v3394_v53  ;;  %v5038_v61 = vld [vmem:[%s5719_s0 + $0x2c] sm:$0xf0]  ;;  %v4675_v3 = vor.u32 %v5354_v51, %v4674_v50 }
  0x28   :  { %2710 = vmatpush.bf16.msra.mxu2 %v3775_v20  ;;  %v4334_v59 = vld [vmem:[#allocation2 + $0x708] sm:$0xf]  ;;  %v5269_v63 = vld [vmem:[#allocation2 + $0x718] sm:$0xf0]  ;;  %v5543_v2 = vor.u32 %v5038_v61, %v3402_v55  ;;  %v5032_v5 = vld [vmem:[%s5719_s0 + $0x4] sm:$0xf]  ;;  %v4175_v11 = vor.u32 %v5229_v58, %v4174_v52 }
  0x29   :  { %2724 = vmatpush.bf16.msra.mxu3 %v3935_v24  ;;  %v4494_v0 = vld [vmem:[#allocation2 + $0x848] sm:$0xf]  ;;  %v5309_v1 = vld [vmem:[#allocation2 + $0x858] sm:$0xf0]  ;;  %v3396_v6 = vld [vmem:[%s5719_s0 + $0x28] sm:$0xf0]  ;;  %v4335_v12 = vor.u32 %v5269_v63, %v4334_v59 }
  0x2a   :  { %2683 = vmatpush.bf16.msra.mxu0 %v3435_v31  ;;  %v4654_v4 = vld [vmem:[#allocation2 + $0x988] sm:$0xf]  ;;  %v5349_v7 = vld [vmem:[#allocation2 + $0x998] sm:$0xf0]  ;;  %v5553_v8 = vor.u32 %v5032_v5, %v3396_v6  ;;  %v5033_v9 = vld [vmem:[%s5719_s0 + $0xc] sm:$0xf]  ;;  %v4495_v15 = vor.u32 %v5309_v1, %v4494_v0 }
  0x2b   :  { %2697 = vmatpush.bf16.msra.mxu1 %v3595_v35  ;;  %v3404_v10 = vld [vmem:[%s5719_s0 + $0x30] sm:$0xf0]  ;;  %v4154_v13 = vld [vmem:[#allocation2 + $0x5a0] sm:$0xf]  ;;  %v4655_v19 = vor.u32 %v5349_v7, %v4654_v4  ;;  %v4134_v26 = vld [vmem:[#allocation2 + $0x578] sm:$0xf] }
  0x2c   :  { %2711 = vmatpush.bf16.msra.mxu2 %v3755_v36  ;;  %v5561_v14 = vor.u32 %v5033_v9, %v3404_v10  ;;  %v5224_v16 = vld [vmem:[#allocation2 + $0x5b0] sm:$0xf0]  ;;  %v4314_v17 = vld [vmem:[#allocation2 + $0x6e0] sm:$0xf]  ;;  %v5219_v28 = vld [vmem:[#allocation2 + $0x588] sm:$0xf0] }
  0x2d   :  { %2725 = vmatpush.bf16.msra.mxu3 %v3915_v44  ;;  %2684 = vmatmul.bf16.vlgmr.msra.gmra.mxu0 %v5538_v60  ;;  %v5264_v18 = vld [vmem:[#allocation2 + $0x6f0] sm:$0xf0]  ;;  %v4474_v20 = vld [vmem:[#allocation2 + $0x820] sm:$0xf]  ;;  %v4155_v24 = vor.u32 %v5224_v16, %v4154_v13  ;;  %v4294_v29 = vld [vmem:[#allocation2 + $0x6b8] sm:$0xf]  ;;  %v4135_v36 = vor.u32 %v5219_v28, %v4134_v26 }
  0x2e   :  { %2732 = vmatpush.bf16.msrb.mxu0 %v4215_v39  ;;  %2698 = vmatmul.bf16.vlgmr.msra.gmra.mxu1 %v5553_v8  ;;  %v5304_v21 = vld [vmem:[#allocation2 + $0x830] sm:$0xf0]  ;;  %v4634_v22 = vld [vmem:[#allocation2 + $0x960] sm:$0xf]  ;;  %v4315_v25 = vor.u32 %v5264_v18, %v4314_v17  ;;  %v5259_v30 = vld [vmem:[#allocation2 + $0x6c8] sm:$0xf0] }
  0x2f   :  { %2746 = vmatpush.bf16.msrb.mxu1 %v4375_v40  ;;  %2712 = vmatmul.bf16.vlgmr.msra.gmra.mxu2 %v5543_v2  ;;  %v5344_v23 = vld [vmem:[#allocation2 + $0x970] sm:$0xf0]  ;;  %v4475_v27 = vor.u32 %v5304_v21, %v4474_v20  ;;  %v4454_v32 = vld [vmem:[#allocation2 + $0x7f8] sm:$0xf]  ;;  %v5299_v33 = vld [vmem:[#allocation2 + $0x808] sm:$0xf0]  ;;  %v4295_v37 = vor.u32 %v5259_v30, %v4294_v29 }
  0x30   :  { %2760 = vmatpush.bf16.msrb.mxu2 %v4535_v43  ;;  %2726 = vmatmul.bf16.vlgmr.msra.gmra.mxu3 %v5561_v14  ;;  %v4635_v31 = vor.u32 %v5344_v23, %v4634_v22  ;;  %v4614_v34 = vld [vmem:[#allocation2 + $0x938] sm:$0xf]  ;;  %v5339_v35 = vld [vmem:[#allocation2 + $0x948] sm:$0xf0]  ;;  %v4114_v38 = vld [vmem:[#allocation2 + $0x550] sm:$0xf]  ;;  %v4455_v39 = vor.u32 %v5299_v33, %v4454_v32 }
  0x31   :  { %2774 = vmatpush.bf16.msrb.mxu3 %v4695_v48  ;;  %v5214_v40 = vld [vmem:[#allocation2 + $0x560] sm:$0xf0]  ;;  %v4274_v41 = vld [vmem:[#allocation2 + $0x690] sm:$0xf]  ;;  %v4615_v43 = vor.u32 %v5339_v35, %v4614_v34  ;;  %v4094_v50 = vld [vmem:[#allocation2 + $0x528] sm:$0xf] }
  0x32   :  { %2733 = vmatpush.bf16.msrb.mxu0 %v4195_v56  ;;  %v5254_v42 = vld [vmem:[#allocation2 + $0x6a0] sm:$0xf0]  ;;  %v4434_v44 = vld [vmem:[#allocation2 + $0x7d0] sm:$0xf]  ;;  %v4115_v48 = vor.u32 %v5214_v40, %v4114_v38  ;;  %v5209_v51 = vld [vmem:[#allocation2 + $0x538] sm:$0xf0] }
  0x33   :  { %2747 = vmatpush.bf16.msrb.mxu1 %v4355_v57  ;;  %v5294_v45 = vld [vmem:[#allocation2 + $0x7e0] sm:$0xf0]  ;;  %v4594_v46 = vld [vmem:[#allocation2 + $0x910] sm:$0xf]  ;;  %v4275_v49 = vor.u32 %v5254_v42, %v4274_v41  ;;  %v4254_v53 = vld [vmem:[#allocation2 + $0x668] sm:$0xf]  ;;  %v4095_v1 = vor.u32 %v5209_v51, %v4094_v50 }
  0x34   :  { %2761 = vmatpush.bf16.msrb.mxu2 %v4515_v62  ;;  %v5334_v47 = vld [vmem:[#allocation2 + $0x920] sm:$0xf0]  ;;  %v4435_v52 = vor.u32 %v5294_v45, %v4434_v44  ;;  %v5249_v54 = vld [vmem:[#allocation2 + $0x678] sm:$0xf0]  ;;  %v4414_v55 = vld [vmem:[#allocation2 + $0x7a8] sm:$0xf] }
  0x35   :  { %2775 = vmatpush.bf16.msrb.mxu3 %v4675_v3  ;;  %v4595_v56 = vor.u32 %v5334_v47, %v4594_v46  ;;  %v5289_v57 = vld [vmem:[#allocation2 + $0x7b8] sm:$0xf0]  ;;  %v4574_v58 = vld [vmem:[#allocation2 + $0x8e8] sm:$0xf]  ;;  %v4074_v61 = vld [vmem:[#allocation2 + $0x500] sm:$0xf]  ;;  %v4255_v3 = vor.u32 %v5249_v54, %v4254_v53 }
  0x36   :  { %2734 = vmatpush.bf16.msrb.mxu0 %v4175_v11  ;;  %v5329_v59 = vld [vmem:[#allocation2 + $0x8f8] sm:$0xf0]  ;;  %v5204_v62 = vld [vmem:[#allocation2 + $0x510] sm:$0xf0]  ;;  %v4234_v63 = vld [vmem:[#allocation2 + $0x640] sm:$0xf]  ;;  %v4415_v7 = vor.u32 %v5289_v57, %v4414_v55 }
  0x37   :  { %2748 = vmatpush.bf16.msrb.mxu1 %v4335_v12  ;;  %v5244_v0 = vld [vmem:[#allocation2 + $0x650] sm:$0xf0]  ;;  %v4394_v4 = vld [vmem:[#allocation2 + $0x780] sm:$0xf]  ;;  %v4854_v6 = vld [vmem:[#allocation2 + $0xb18] sm:$0xf]  ;;  %v4575_v12 = vor.u32 %v5329_v59, %v4574_v58  ;;  %v4075_v20 = vor.u32 %v5204_v62, %v4074_v61 }
  0x38   :  { %2762 = vmatpush.bf16.msrb.mxu2 %v4495_v15  ;;  %v5284_v5 = vld [vmem:[#allocation2 + $0x790] sm:$0xf0]  ;;  %v5399_v9 = vld [vmem:[#allocation2 + $0xb28] sm:$0xf0]  ;;  %v5014_v10 = vld [vmem:[#allocation2 + $0xc58] sm:$0xf]  ;;  %v4235_v21 = vor.u32 %v5244_v0, %v4234_v63 }
  0x39   :  { %2776 = vmatpush.bf16.msrb.mxu3 %v4655_v19  ;;  %v5439_v11 = vld [vmem:[#allocation2 + $0xc68] sm:$0xf0]  ;;  %v5077_v13 = vld [vmem:[#allocation2 + $0x11c] sm:$0xf]  ;;  %v3576_v15 = vld [vmem:[#allocation2 + $0x12c] sm:$0xf0]  ;;  %v4855_v26 = vor.u32 %v5399_v9, %v4854_v6 }
  0x3a   :  { %2735 = vmatpush.bf16.msrb.mxu0 %v4155_v24  ;;  %v4554_v16 = vld [vmem:[#allocation2 + $0x8c0] sm:$0xf]  ;;  %v5324_v17 = vld [vmem:[#allocation2 + $0x8d0] sm:$0xf0]  ;;  %v3410_v18 = vld [vmem:[%s5719_s0 + $0x10] sm:$0xf]  ;;  %v5015_v30 = vor.u32 %v5439_v11, %v5014_v10 }
  0x3b   :  { %2749 = vmatpush.bf16.msrb.mxu1 %v4315_v25  ;;  %v5039_v19 = vld [vmem:[%s5719_s0 + $0x34] sm:$0xf0]  ;;  %v5040_v23 = vld [vmem:[%s5719_s0 + $0x3c] sm:$0xf0]  ;;  %v5117_v24 = vld [vmem:[#allocation2 + $0x25c] sm:$0xf]  ;;  %v4395_v25 = vor.u32 %v5284_v5, %v4394_v4  ;;  %v4555_v35 = vor.u32 %v5324_v17, %v4554_v16 }
  0x3c   :  { %2763 = vmatpush.bf16.msrb.mxu2 %v4475_v27  ;;  %v3418_v22 = vld [vmem:[%s5719_s0 + $0x18] sm:$0xf]  ;;  %v3736_v27 = vld [vmem:[#allocation2 + $0x26c] sm:$0xf0]  ;;  %v5034_v28 = vld [vmem:[%s5719_s0 + $0x14] sm:$0xf] }
  0x3d   :  { %2777 = vmatpush.bf16.msrb.mxu3 %v4635_v31  ;;  %v3412_v29 = vld [vmem:[%s5719_s0 + $0x38] sm:$0xf0]  ;;  %v3579_v31 = vor.u32 %v5077_v13, %v3576_v15  ;;  %v4834_v33 = vld [vmem:[#allocation2 + $0xaf0] sm:$0xf]  ;;  %v5394_v34 = vld [vmem:[#allocation2 + $0xb00] sm:$0xf0]  ;;  %v5591_v40 = vor.u32 %v5040_v23, %v3418_v22  ;;  %v3739_v41 = vor.u32 %v5117_v24, %v3736_v27 }
  0x3e   :  { %2736 = vmatpush.bf16.msrb.mxu0 %v4135_v36  ;;  %v5035_v32 = vld [vmem:[%s5719_s0 + $0x1c] sm:$0xf]  ;;  %v5586_v36 = vor.u32 %v5039_v19, %v3410_v18  ;;  %v4994_v38 = vld [vmem:[#allocation2 + $0xc30] sm:$0xf]  ;;  %v5072_v42 = vld [vmem:[#allocation2 + $0xf4] sm:$0xf]  ;;  %v5593_v44 = vor.u32 %v5034_v28, %v3412_v29  ;;  %v4835_v45 = vor.u32 %v5394_v34, %v4834_v33 }
  0x3f   :  { %2750 = vmatpush.bf16.msrb.mxu1 %v4295_v37  ;;  %v3420_v37 = vld [vmem:[%s5719_s0 + $0x40] sm:$0xf0]  ;;  %v5112_v46 = vld [vmem:[#allocation2 + $0x234] sm:$0xf]  ;;  %v3716_v47 = vld [vmem:[#allocation2 + $0x244] sm:$0xf0] }
  0x40   :  { %2764 = vmatpush.bf16.msrb.mxu2 %v4455_v39  ;;  %v5434_v39 = vld [vmem:[#allocation2 + $0xc40] sm:$0xf0]  ;;  %v4814_v50 = vld [vmem:[#allocation2 + $0xac8] sm:$0xf]  ;;  %v5389_v51 = vld [vmem:[#allocation2 + $0xad8] sm:$0xf0]  ;;  %v3719_v55 = vor.u32 %v5112_v46, %v3716_v47 }
  0x41   :  { %2778 = vmatpush.bf16.msrb.mxu3 %v4615_v43  ;;  %v3556_v43 = vld [vmem:[#allocation2 + $0x104] sm:$0xf0]  ;;  %v5429_v54 = vld [vmem:[#allocation2 + $0xc18] sm:$0xf0]  ;;  %v3536_v57 = vld [vmem:[#allocation2 + $0xdc] sm:$0xf0]  ;;  %v4815_v58 = vor.u32 %v5389_v51, %v4814_v50 }
  0x42   :  { %2737 = vmatpush.bf16.msrb.mxu0 %v4115_v48  ;;  %v5595_v48 = vor.u32 %v5035_v32, %v3420_v37  ;;  %v4974_v53 = vld [vmem:[#allocation2 + $0xc08] sm:$0xf]  ;;  %v5107_v59 = vld [vmem:[#allocation2 + $0x20c] sm:$0xf]  ;;  %v3696_v61 = vld [vmem:[#allocation2 + $0x21c] sm:$0xf0] }
  0x43   :  { %2751 = vmatpush.bf16.msrb.mxu1 %v4275_v49  ;;  %v4995_v49 = vor.u32 %v5434_v39, %v4994_v38  ;;  %v4975_v62 = vor.u32 %v5429_v54, %v4974_v53  ;;  %v4794_v63 = vld [vmem:[#allocation2 + $0xaa0] sm:$0xf]  ;;  %v5384_v0 = vld [vmem:[#allocation2 + $0xab0] sm:$0xf0]  ;;  %v3699_v5 = vor.u32 %v5107_v59, %v3696_v61  ;;  %v5062_v6 = vld [vmem:[#allocation2 + $0xa4] sm:$0xf] }
  0x44   :  { %2765 = vmatpush.bf16.msrb.mxu2 %v4435_v52  ;;  %v3559_v52 = vor.u32 %v5072_v42, %v3556_v43  ;;  %v5424_v4 = vld [vmem:[#allocation2 + $0xbf0] sm:$0xf0]  ;;  %v4795_v9 = vor.u32 %v5384_v0, %v4794_v63  ;;  %v5102_v10 = vld [vmem:[#allocation2 + $0x1e4] sm:$0xf]  ;;  %v3676_v11 = vld [vmem:[#allocation2 + $0x1f4] sm:$0xf0] }
  0x45   :  { %2779 = vmatpush.bf16.msrb.mxu3 %v4595_v56  ;;  %v5067_v56 = vld [vmem:[#allocation2 + $0xcc] sm:$0xf]  ;;  %v4774_v13 = vld [vmem:[#allocation2 + $0xa78] sm:$0xf]  ;;  %v3679_v19 = vor.u32 %v5102_v10, %v3676_v11  ;;  %v5097_v23 = vld [vmem:[#allocation2 + $0x1bc] sm:$0xf] }
  0x46   :  { %2738 = vmatpush.bf16.msrb.mxu0 %v4095_v1  ;;  %v3539_v1 = vor.u32 %v5067_v56, %v3536_v57  ;;  %v5379_v15 = vld [vmem:[#allocation2 + $0xa88] sm:$0xf0]  ;;  %v4934_v17 = vld [vmem:[#allocation2 + $0xbb8] sm:$0xf]  ;;  %v3656_v24 = vld [vmem:[#allocation2 + $0x1cc] sm:$0xf0] }
  0x47   :  { %2752 = vmatpush.bf16.msrb.mxu1 %v4255_v3  ;;  %v4954_v3 = vld [vmem:[#allocation2 + $0xbe0] sm:$0xf]  ;;  %v5419_v18 = vld [vmem:[#allocation2 + $0xbc8] sm:$0xf0]  ;;  %v4775_v22 = vor.u32 %v5379_v15, %v4774_v13  ;;  %v5374_v27 = vld [vmem:[#allocation2 + $0xa60] sm:$0xf0] }
  0x48   :  { %2766 = vmatpush.bf16.msrb.mxu2 %v4415_v7  ;;  %v3516_v7 = vld [vmem:[#allocation2 + $0xb4] sm:$0xf0]  ;;  %v4914_v29 = vld [vmem:[#allocation2 + $0xb90] sm:$0xf]  ;;  %v5052_v32 = vld [vmem:[#allocation2 + $0x54] sm:$0xf] }
  0x49   :  { %2780 = vmatpush.bf16.msrb.mxu3 %v4575_v12  ;;  %v4955_v12 = vor.u32 %v5424_v4, %v4954_v3  ;;  %v3519_v16 = vor.u32 %v5062_v6, %v3516_v7  ;;  %v3476_v33 = vld [vmem:[#allocation2 + $0x64] sm:$0xf0]  ;;  %v5047_v46 = vld [vmem:[#allocation2 + $0x2c] sm:$0xf]  ;;  %v3456_v47 = vld [vmem:[#allocation2 + $0x3c] sm:$0xf0] }
  0x4a   :  { %2739 = vmatpush.bf16.msrb.mxu0 %v4075_v20  ;;  %v5057_v20 = vld [vmem:[#allocation2 + $0x7c] sm:$0xf]  ;;  %v3636_v37 = vld [vmem:[#allocation2 + $0x1a4] sm:$0xf0]  ;;  %v3479_v43 = vor.u32 %v5052_v32, %v3476_v33  ;;  %v5087_v50 = vld [vmem:[#allocation2 + $0x16c] sm:$0xf] }
  0x4b   :  { %2753 = vmatpush.bf16.msrb.mxu1 %v4235_v21  ;;  %v3496_v21 = vld [vmem:[#allocation2 + $0x8c] sm:$0xf0]  ;;  %v4734_v39 = vld [vmem:[#allocation2 + $0xa28] sm:$0xf]  ;;  %v3616_v51 = vld [vmem:[#allocation2 + $0x17c] sm:$0xf0] }
  0x4c   :  { %2767 = vmatpush.bf16.msrb.mxu2 %v4395_v25  ;;  %v4935_v25 = vor.u32 %v5419_v18, %v4934_v17  ;;  %v3499_v28 = vor.u32 %v5057_v20, %v3496_v21  ;;  %v4894_v42 = vld [vmem:[#allocation2 + $0xb68] sm:$0xf]  ;;  %v5364_v54 = vld [vmem:[#allocation2 + $0xa10] sm:$0xf0]  ;;  %v3436_v59 = vld [vmem:[#allocation2 + $0x14] sm:$0xf0]  ;;  %v3619_v3 = vor.u32 %v5087_v50, %v3616_v51 }
  0x4d   :  { %2781 = vmatpush.bf16.msrb.mxu3 %v4555_v35  ;;  %2740 = vmatmul.bf16.vlgmr.msrb.gmra.mxu0 %v5586_v36  ;;  %v5092_v35 = vld [vmem:[#allocation2 + $0x194] sm:$0xf]  ;;  %v5157_v61 = vld [vmem:[#allocation2 + $0x39c] sm:$0xf]  ;;  %v3896_v63 = vld [vmem:[#allocation2 + $0x3ac] sm:$0xf0] }
  0x4e   :  { %2788 = vmatpush.bf16.msra.mxu0 %v4855_v26  ;;  %2754 = vmatmul.bf16.vlgmr.msrb.gmra.mxu1 %v5593_v44  ;;  %v4754_v26 = vld [vmem:[#allocation2 + $0xa50] sm:$0xf]  ;;  %v5404_v56 = vld [vmem:[#allocation2 + $0xb50] sm:$0xf0]  ;;  %v5197_v0 = vld [vmem:[#allocation2 + $0x4dc] sm:$0xf]  ;;  %v3899_v13 = vor.u32 %v5157_v61, %v3896_v63 }
  0x4f   :  { %2802 = vmatpush.bf16.msra.mxu1 %v5015_v30  ;;  %2768 = vmatmul.bf16.vlgmr.msrb.gmra.mxu2 %v5591_v40  ;;  %v5414_v30 = vld [vmem:[#allocation2 + $0xba0] sm:$0xf0]  ;;  %v4755_v34 = vor.u32 %v5374_v27, %v4754_v26  ;;  %v5237_v4 = vld [vmem:[#allocation2 + $0x61c] sm:$0xf]  ;;  %v3426_v10 = vld [vmem:[%s5719_s0 + $0x20] sm:$0xf] }
  0x50   :  { %2816 = vmatpush.bf16.msra.mxu2 %v3579_v31  ;;  %2782 = vmatmul.bf16.vlgmr.msrb.gmra.mxu3 %v5595_v48  ;;  %v3659_v31 = vor.u32 %v5097_v23, %v3656_v24  ;;  %v4915_v38 = vor.u32 %v5414_v30, %v4914_v29  ;;  %v5082_v6 = vld [vmem:[#allocation2 + $0x144] sm:$0xf]  ;;  %v5041_v11 = vld [vmem:[%s5719_s0 + $0x44] sm:$0xf0]  ;;  %v5277_v15 = vld [vmem:[#allocation2 + $0x75c] sm:$0xf] }
  0x51   :  { %2830 = vmatpush.bf16.msra.mxu3 %v3739_v41  ;;  %v5369_v41 = vld [vmem:[#allocation2 + $0xa38] sm:$0xf0]  ;;  %v5036_v17 = vld [vmem:[%s5719_s0 + $0x24] sm:$0xf]  ;;  %v3428_v20 = vld [vmem:[%s5719_s0 + $0x48] sm:$0xf0]  ;;  %v5613_v27 = vor.u32 %v5041_v11, %v3426_v10 }
  0x52   :  { %2789 = vmatpush.bf16.msra.mxu0 %v4835_v45  ;;  %v5409_v45 = vld [vmem:[#allocation2 + $0xb78] sm:$0xf0]  ;;  %v4735_v53 = vor.u32 %v5369_v41, %v4734_v39  ;;  %v5152_v21 = vld [vmem:[#allocation2 + $0x374] sm:$0xf]  ;;  %v4036_v26 = vld [vmem:[#allocation2 + $0x4c4] sm:$0xf0] }
  0x53   :  { %2803 = vmatpush.bf16.msra.mxu1 %v4995_v49  ;;  %v3639_v49 = vor.u32 %v5092_v35, %v3636_v37  ;;  %v4895_v57 = vor.u32 %v5409_v45, %v4894_v42  ;;  %v5232_v29 = vld [vmem:[#allocation2 + $0x5f4] sm:$0xf]  ;;  %v4196_v30 = vld [vmem:[#allocation2 + $0x604] sm:$0xf0]  ;;  %v5147_v37 = vld [vmem:[#allocation2 + $0x34c] sm:$0xf] }
  0x54   :  { %2817 = vmatpush.bf16.msra.mxu2 %v3559_v52  ;;  %v4714_v52 = vld [vmem:[#allocation2 + $0xa00] sm:$0xf]  ;;  %v5272_v33 = vld [vmem:[#allocation2 + $0x734] sm:$0xf]  ;;  %v4199_v39 = vor.u32 %v5232_v29, %v4196_v30  ;;  %v5187_v41 = vld [vmem:[#allocation2 + $0x48c] sm:$0xf] }
  0x55   :  { %2831 = vmatpush.bf16.msra.mxu3 %v3719_v55  ;;  %v4874_v55 = vld [vmem:[#allocation2 + $0xb40] sm:$0xf]  ;;  %v4715_v7 = vor.u32 %v5364_v54, %v4714_v52  ;;  %v5227_v45 = vld [vmem:[#allocation2 + $0x5cc] sm:$0xf]  ;;  %v5142_v52 = vld [vmem:[#allocation2 + $0x324] sm:$0xf] }
  0x56   :  { %2790 = vmatpush.bf16.msra.mxu0 %v4815_v58  ;;  %v5042_v58 = vld [vmem:[#allocation2 + $0x4] sm:$0xf]  ;;  %v4016_v42 = vld [vmem:[#allocation2 + $0x49c] sm:$0xf0]  ;;  %v4316_v63 = vld [vmem:[#allocation2 + $0x6f4] sm:$0xf0] }
  0x57   :  { %2804 = vmatpush.bf16.msra.mxu1 %v4975_v62  ;;  %v3459_v62 = vor.u32 %v5047_v46, %v3456_v47  ;;  %v3439_v18 = vor.u32 %v5042_v58, %v3436_v59  ;;  %v4176_v46 = vld [vmem:[#allocation2 + $0x5dc] sm:$0xf0]  ;;  %v4019_v51 = vor.u32 %v5187_v41, %v4016_v42  ;;  %v5222_v58 = vld [vmem:[#allocation2 + $0x5a4] sm:$0xf]  ;;  %v4156_v59 = vld [vmem:[#allocation2 + $0x5b4] sm:$0xf0] }
  0x58   :  { %2818 = vmatpush.bf16.msra.mxu2 %v3539_v1  ;;  %v4056_v1 = vld [vmem:[#allocation2 + $0x4ec] sm:$0xf0]  ;;  %v4336_v50 = vld [vmem:[#allocation2 + $0x71c] sm:$0xf0]  ;;  %v4179_v54 = vor.u32 %v5227_v45, %v4176_v46  ;;  %v5127_v29 = vld [vmem:[#allocation2 + $0x2ac] sm:$0xf] }
  0x59   :  { %2832 = vmatpush.bf16.msra.mxu3 %v3699_v5  ;;  %v4216_v5 = vld [vmem:[#allocation2 + $0x62c] sm:$0xf0]  ;;  %v3776_v30 = vld [vmem:[#allocation2 + $0x2bc] sm:$0xf0]  ;;  %v3756_v45 = vld [vmem:[#allocation2 + $0x294] sm:$0xf0] }
  0x5a   :  { %2791 = vmatpush.bf16.msra.mxu0 %v4795_v9  ;;  %v3596_v9 = vld [vmem:[#allocation2 + $0x154] sm:$0xf0]  ;;  %v4219_v23 = vor.u32 %v5237_v4, %v4216_v5  ;;  %v4159_v4 = vor.u32 %v5222_v58, %v4156_v59  ;;  %v5177_v5 = vld [vmem:[#allocation2 + $0x43c] sm:$0xf]  ;;  %v4136_v10 = vld [vmem:[#allocation2 + $0x58c] sm:$0xf0]  ;;  %v3779_v41 = vor.u32 %v5127_v29, %v3776_v30 }
  0x5b   :  { %2805 = vmatpush.bf16.msra.mxu1 %v4955_v12  ;;  %v4875_v12 = vor.u32 %v5404_v56, %v4874_v55  ;;  %v3599_v24 = vor.u32 %v5082_v6, %v3596_v9  ;;  %v5182_v55 = vld [vmem:[#allocation2 + $0x464] sm:$0xf]  ;;  %v3996_v56 = vld [vmem:[#allocation2 + $0x474] sm:$0xf0]  ;;  %v3976_v6 = vld [vmem:[#allocation2 + $0x44c] sm:$0xf0] }
  0x5c   :  { %2819 = vmatpush.bf16.msra.mxu2 %v3519_v16  ;;  %v4376_v16 = vld [vmem:[#allocation2 + $0x76c] sm:$0xf0]  ;;  %v5217_v9 = vld [vmem:[#allocation2 + $0x57c] sm:$0xf]  ;;  %v4256_v42 = vld [vmem:[#allocation2 + $0x67c] sm:$0xf0] }
  0x5d   :  { %2833 = vmatpush.bf16.msra.mxu3 %v3679_v19  ;;  %v4059_v19 = vor.u32 %v5197_v0, %v4056_v1  ;;  %v3999_v0 = vor.u32 %v5182_v55, %v3996_v56  ;;  %v5137_v1 = vld [vmem:[#allocation2 + $0x2fc] sm:$0xf]  ;;  %v5387_v29 = vld [vmem:[#allocation2 + $0xacc] sm:$0xf]  ;;  %v4816_v30 = vld [vmem:[#allocation2 + $0xadc] sm:$0xf0] }
  0x5e   :  { %2792 = vmatpush.bf16.msra.mxu0 %v4775_v22  ;;  %v3876_v22 = vld [vmem:[#allocation2 + $0x384] sm:$0xf0]  ;;  %v5357_v56 = vld [vmem:[#allocation2 + $0x9dc] sm:$0xf] }
  0x5f   :  { %2806 = vmatpush.bf16.msra.mxu1 %v4935_v25  ;;  %v5192_v25 = vld [vmem:[#allocation2 + $0x4b4] sm:$0xf]  ;;  %v3879_v32 = vor.u32 %v5152_v21, %v3876_v22  ;;  %v5397_v58 = vld [vmem:[#allocation2 + $0xb1c] sm:$0xf] }
  0x60   :  { %2820 = vmatpush.bf16.msra.mxu2 %v3499_v28  ;;  %v4379_v28 = vor.u32 %v5277_v15, %v4376_v16  ;;  %v4039_v35 = vor.u32 %v5192_v25, %v4036_v26  ;;  %v3979_v15 = vor.u32 %v5177_v5, %v3976_v6  ;;  %v5132_v16 = vld [vmem:[#allocation2 + $0x2d4] sm:$0xf]  ;;  %v4276_v26 = vld [vmem:[#allocation2 + $0x6a4] sm:$0xf0] }
  0x61   :  { %2834 = vmatpush.bf16.msra.mxu3 %v3659_v31  ;;  %v5615_v31 = vor.u32 %v5036_v17, %v3428_v20  ;;  %v3796_v17 = vld [vmem:[#allocation2 + $0x2e4] sm:$0xf0]  ;;  %v5212_v22 = vld [vmem:[#allocation2 + $0x554] sm:$0xf] }
  0x62   :  { %2793 = vmatpush.bf16.msra.mxu0 %v4755_v34  ;;  %v4356_v34 = vld [vmem:[#allocation2 + $0x744] sm:$0xf0]  ;;  %v5252_v25 = vld [vmem:[#allocation2 + $0x694] sm:$0xf] }
  0x63   :  { %2807 = vmatpush.bf16.msra.mxu1 %v4915_v38  ;;  %v3856_v38 = vld [vmem:[#allocation2 + $0x35c] sm:$0xf0]  ;;  %v3956_v20 = vld [vmem:[#allocation2 + $0x424] sm:$0xf0] }
  0x64   :  { %2821 = vmatpush.bf16.msra.mxu2 %v3479_v43  ;;  %v4359_v43 = vor.u32 %v5272_v33, %v4356_v34  ;;  %v3859_v47 = vor.u32 %v5147_v37, %v3856_v38  ;;  %v5167_v33 = vld [vmem:[#allocation2 + $0x3ec] sm:$0xf]  ;;  %v3936_v34 = vld [vmem:[#allocation2 + $0x3fc] sm:$0xf0] }
  0x65   :  { %2835 = vmatpush.bf16.msra.mxu3 %v3639_v49  ;;  %v5267_v49 = vld [vmem:[#allocation2 + $0x70c] sm:$0xf]  ;;  %v4096_v38 = vld [vmem:[#allocation2 + $0x53c] sm:$0xf0]  ;;  %v3939_v46 = vor.u32 %v5167_v33, %v3936_v34 }
  0x66   :  { %2794 = vmatpush.bf16.msra.mxu0 %v4735_v53  ;;  %v3836_v53 = vld [vmem:[#allocation2 + $0x334] sm:$0xf0]  ;;  %v5207_v37 = vld [vmem:[#allocation2 + $0x52c] sm:$0xf]  ;;  %v4976_v34 = vld [vmem:[#allocation2 + $0xc1c] sm:$0xf0] }
  0x67   :  { %2808 = vmatpush.bf16.msra.mxu1 %v4895_v57  ;;  %v4339_v57 = vor.u32 %v5267_v49, %v4336_v50  ;;  %v3839_v61 = vor.u32 %v5142_v52, %v3836_v53  ;;  %v3916_v49 = vld [vmem:[#allocation2 + $0x3d4] sm:$0xf0]  ;;  %v5202_v50 = vld [vmem:[#allocation2 + $0x504] sm:$0xf]  ;;  %v5317_v53 = vld [vmem:[#allocation2 + $0x89c] sm:$0xf] }
  0x68   :  { %2822 = vmatpush.bf16.msra.mxu2 %v3459_v62  ;;  %v5262_v62 = vld [vmem:[#allocation2 + $0x6e4] sm:$0xf]  ;;  %v4076_v52 = vld [vmem:[#allocation2 + $0x514] sm:$0xf0]  ;;  %v5427_v33 = vld [vmem:[#allocation2 + $0xc0c] sm:$0xf] }
  0x69   :  { %2836 = vmatpush.bf16.msra.mxu3 %v3619_v3  ;;  %v3816_v3 = vld [vmem:[#allocation2 + $0x30c] sm:$0xf0]  ;;  %v4079_v5 = vor.u32 %v5202_v50, %v4076_v52  ;;  %v4956_v50 = vld [vmem:[#allocation2 + $0xbf4] sm:$0xf0]  ;;  %v5297_v52 = vld [vmem:[#allocation2 + $0x7fc] sm:$0xf] }
  0x6a   :  { %2795 = vmatpush.bf16.msra.mxu0 %v4715_v7  ;;  %v4319_v7 = vor.u32 %v5262_v62, %v4316_v63  ;;  %v3819_v11 = vor.u32 %v5137_v1, %v3816_v3  ;;  %v5242_v62 = vld [vmem:[#allocation2 + $0x644] sm:$0xf]  ;;  %v4236_v63 = vld [vmem:[#allocation2 + $0x654] sm:$0xf0]  ;;  %v5437_v3 = vld [vmem:[#allocation2 + $0xc5c] sm:$0xf] }
  0x6b   :  { %2809 = vmatpush.bf16.msra.mxu1 %v4875_v12  ;;  %v5257_v12 = vld [vmem:[#allocation2 + $0x6bc] sm:$0xf] }
  0x6c   :  { %2823 = vmatpush.bf16.msra.mxu2 %v3439_v18  ;;  %v4139_v18 = vor.u32 %v5217_v9, %v4136_v10  ;;  %v4516_v9 = vld [vmem:[#allocation2 + $0x884] sm:$0xf0] }
  0x6d   :  { %2837 = vmatpush.bf16.msra.mxu3 %v3599_v24  ;;  %2796 = vmatmul.bf16.vlgmr.msra.gmra.mxu0 %v5613_v27  ;;  %v3799_v24 = vor.u32 %v5132_v16, %v3796_v17  ;;  %v5392_v16 = vld [vmem:[#allocation2 + $0xaf4] sm:$0xf]  ;;  %v4836_v17 = vld [vmem:[#allocation2 + $0xb04] sm:$0xf0] }
  0x6e   :  { %2844 = vmatpush.bf16.msrb.mxu0 %v3899_v13  ;;  %2810 = vmatmul.bf16.vlgmr.msra.gmra.mxu1 %v5615_v31  ;;  %v4296_v13 = vld [vmem:[#allocation2 + $0x6cc] sm:$0xf0] }
  0x6f   :  { %2858 = vmatpush.bf16.msrb.mxu1 %v4059_v19  ;;  %2824 = vmatmul.bf16.vlgmr.msra.gmra.mxu2 %v5538_v60  ;;  %v5172_v19 = vld [vmem:[#allocation2 + $0x414] sm:$0xf]  ;;  %v4299_v21 = vor.u32 %v5257_v12, %v4296_v13  ;;  %v4676_v13 = vld [vmem:[#allocation2 + $0x9c4] sm:$0xf0] }
  0x70   :  { %2872 = vmatpush.bf16.msrb.mxu2 %v4219_v23  ;;  %2838 = vmatmul.bf16.vlgmr.msra.gmra.mxu3 %v5553_v8  ;;  %v4116_v23 = vld [vmem:[#allocation2 + $0x564] sm:$0xf0]  ;;  %v5352_v12 = vld [vmem:[#allocation2 + $0x9b4] sm:$0xf] }
  0x71   :  { %2886 = vmatpush.bf16.msrb.mxu3 %v4379_v28  ;;  %v3959_v28 = vor.u32 %v5172_v19, %v3956_v20  ;;  %v5432_v19 = vld [vmem:[#allocation2 + $0xc34] sm:$0xf]  ;;  %v4996_v20 = vld [vmem:[#allocation2 + $0xc44] sm:$0xf0] }
  0x72   :  { %2845 = vmatpush.bf16.msrb.mxu0 %v3879_v32  ;;  %v4119_v32 = vor.u32 %v5212_v22, %v4116_v23  ;;  %v5307_v22 = vld [vmem:[#allocation2 + $0x84c] sm:$0xf]  ;;  %v4496_v23 = vld [vmem:[#allocation2 + $0x85c] sm:$0xf0] }
  0x73   :  { %2859 = vmatpush.bf16.msrb.mxu1 %v4039_v35  ;;  %v4279_v35 = vor.u32 %v5252_v25, %v4276_v26  ;;  %v5347_v25 = vld [vmem:[#allocation2 + $0x98c] sm:$0xf]  ;;  %v4656_v26 = vld [vmem:[#allocation2 + $0x99c] sm:$0xf0] }
  0x74   :  { %2873 = vmatpush.bf16.msrb.mxu2 %v4199_v39  ;;  %v5247_v39 = vld [vmem:[#allocation2 + $0x66c] sm:$0xf] }
  0x75   :  { %2887 = vmatpush.bf16.msrb.mxu3 %v4359_v43  ;;  %v5122_v43 = vld [vmem:[#allocation2 + $0x284] sm:$0xf]  ;;  %v4259_v55 = vor.u32 %v5247_v39, %v4256_v42  ;;  %v4819_v39 = vor.u32 %v5387_v29, %v4816_v30  ;;  %v4636_v42 = vld [vmem:[#allocation2 + $0x974] sm:$0xf0] }
  0x76   :  { %2846 = vmatpush.bf16.msrb.mxu0 %v3859_v47  ;;  %v5162_v47 = vld [vmem:[#allocation2 + $0x3c4] sm:$0xf]  ;;  %v3759_v59 = vor.u32 %v5122_v43, %v3756_v45  ;;  %v4979_v43 = vor.u32 %v5427_v33, %v4976_v34  ;;  %v4396_v29 = vld [vmem:[#allocation2 + $0x794] sm:$0xf0] }
  0x77   :  { %2860 = vmatpush.bf16.msrb.mxu1 %v4019_v51  ;;  %v4099_v51 = vor.u32 %v5207_v37, %v4096_v38  ;;  %v5302_v37 = vld [vmem:[#allocation2 + $0x824] sm:$0xf]  ;;  %v4476_v38 = vld [vmem:[#allocation2 + $0x834] sm:$0xf0] }
  0x78   :  { %2874 = vmatpush.bf16.msrb.mxu2 %v4179_v54  ;;  %v4536_v54 = vld [vmem:[#allocation2 + $0x8ac] sm:$0xf0]  ;;  %v5382_v45 = vld [vmem:[#allocation2 + $0xaa4] sm:$0xf]  ;;  %v4556_v33 = vld [vmem:[#allocation2 + $0x8d4] sm:$0xf0] }
  0x79   :  { %2888 = vmatpush.bf16.msrb.mxu3 %v4339_v57  ;;  %v4696_v57 = vld [vmem:[#allocation2 + $0x9ec] sm:$0xf0]  ;;  %v4539_v1 = vor.u32 %v5317_v53, %v4536_v54  ;;  %v5362_v34 = vld [vmem:[#allocation2 + $0xa04] sm:$0xf] }
  0x7a   :  { %2847 = vmatpush.bf16.msrb.mxu0 %v3839_v61  ;;  %v4856_v61 = vld [vmem:[#allocation2 + $0xb2c] sm:$0xf0]  ;;  %v4699_v6 = vor.u32 %v5357_v56, %v4696_v57 }
  0x7b   :  { %2861 = vmatpush.bf16.msrb.mxu1 %v3999_v0  ;;  %v3919_v0 = vor.u32 %v5162_v47, %v3916_v49  ;;  %v4859_v10 = vor.u32 %v5397_v58, %v4856_v61  ;;  %v4479_v47 = vor.u32 %v5302_v37, %v4476_v38  ;;  %v5422_v49 = vld [vmem:[#allocation2 + $0xbe4] sm:$0xf]  ;;  %v4456_v53 = vld [vmem:[#allocation2 + $0x80c] sm:$0xf0]  ;;  %v5377_v58 = vld [vmem:[#allocation2 + $0xa7c] sm:$0xf] }
  0x7c   :  { %2875 = vmatpush.bf16.msrb.mxu2 %v4159_v4  ;;  %v5016_v4 = vld [vmem:[#allocation2 + $0xc6c] sm:$0xf0]  ;;  %v4959_v57 = vor.u32 %v5422_v49, %v4956_v50  ;;  %v4459_v61 = vor.u32 %v5297_v52, %v4456_v53  ;;  %v4716_v37 = vld [vmem:[#allocation2 + $0xa14] sm:$0xf0]  ;;  %v3582_v38 = vld [vmem:[#allocation2 + $0x120] sm:$0xf] }
  0x7d   :  { %2889 = vmatpush.bf16.msrb.mxu3 %v4319_v7  ;;  %v5312_v7 = vld [vmem:[#allocation2 + $0x874] sm:$0xf]  ;;  %v4616_v56 = vld [vmem:[#allocation2 + $0x94c] sm:$0xf0]  ;;  %v5402_v49 = vld [vmem:[#allocation2 + $0xb44] sm:$0xf] }
  0x7e   :  { %2848 = vmatpush.bf16.msrb.mxu0 %v3819_v11  ;;  %v4239_v11 = vor.u32 %v5242_v62, %v4236_v63  ;;  %v5417_v62 = vld [vmem:[#allocation2 + $0xbbc] sm:$0xf]  ;;  %v4936_v63 = vld [vmem:[#allocation2 + $0xbcc] sm:$0xf0]  ;;  %v4876_v50 = vld [vmem:[#allocation2 + $0xb54] sm:$0xf0] }
  0x7f   :  { %2862 = vmatpush.bf16.msrb.mxu1 %v3979_v15  ;;  %v5019_v15 = vor.u32 %v5437_v3, %v5016_v4  ;;  %v4436_v3 = vld [vmem:[#allocation2 + $0x7e4] sm:$0xf0]  ;;  %v4062_v53 = vld [vmem:[#allocation2 + $0x4e0] sm:$0xf] }
  0x80   :  { %2876 = vmatpush.bf16.msrb.mxu2 %v4139_v18  ;;  %v4519_v18 = vor.u32 %v5312_v7, %v4516_v9  ;;  %v4939_v7 = vor.u32 %v5417_v62, %v4936_v63  ;;  %v5372_v9 = vld [vmem:[#allocation2 + $0xa54] sm:$0xf]  ;;  %v3722_v62 = vld [vmem:[#allocation2 + $0x238] sm:$0xf] }
  0x81   :  { %2890 = vmatpush.bf16.msrb.mxu3 %v4299_v21  ;;  %v4679_v21 = vor.u32 %v5352_v12, %v4676_v13  ;;  %v5412_v12 = vld [vmem:[#allocation2 + $0xb94] sm:$0xf]  ;;  %v4916_v13 = vld [vmem:[#allocation2 + $0xba4] sm:$0xf0] }
  0x82   :  { %2849 = vmatpush.bf16.msrb.mxu0 %v3799_v24  ;;  %v4839_v24 = vor.u32 %v5392_v16, %v4836_v17  ;;  %v5287_v16 = vld [vmem:[#allocation2 + $0x7ac] sm:$0xf]  ;;  %v4416_v17 = vld [vmem:[#allocation2 + $0x7bc] sm:$0xf0] }
  0x83   :  { %2863 = vmatpush.bf16.msrb.mxu1 %v3959_v28  ;;  %v4999_v28 = vor.u32 %v5432_v19, %v4996_v20  ;;  %v5327_v19 = vld [vmem:[#allocation2 + $0x8ec] sm:$0xf]  ;;  %v4576_v20 = vld [vmem:[#allocation2 + $0x8fc] sm:$0xf0] }
  0x84   :  { %2877 = vmatpush.bf16.msrb.mxu2 %v4119_v32  ;;  %v4499_v32 = vor.u32 %v5307_v22, %v4496_v23  ;;  %v5367_v22 = vld [vmem:[#allocation2 + $0xa2c] sm:$0xf]  ;;  %v4736_v23 = vld [vmem:[#allocation2 + $0xa3c] sm:$0xf0]  ;;  %v4579_v30 = vor.u32 %v5327_v19, %v4576_v20  ;;  %v5190_v19 = vld [vmem:[#allocation2 + $0x4a0] sm:$0xf0] }
  0x85   :  { %2891 = vmatpush.bf16.msrb.mxu3 %v4279_v35  ;;  %v4659_v35 = vor.u32 %v5347_v25, %v4656_v26  ;;  %v4419_v25 = vor.u32 %v5287_v16, %v4416_v17  ;;  %v4896_v26 = vld [vmem:[#allocation2 + $0xb7c] sm:$0xf0]  ;;  %v3862_v16 = vld [vmem:[#allocation2 + $0x350] sm:$0xf]  ;;  %v5150_v17 = vld [vmem:[#allocation2 + $0x360] sm:$0xf0] }
  0x86   :  { %2850 = vmatpush.bf16.msrb.mxu0 %v3779_v41  ;;  %v5342_v41 = vld [vmem:[#allocation2 + $0x964] sm:$0xf] }
  0x87   :  { %2864 = vmatpush.bf16.msrb.mxu1 %v3939_v46  ;;  %v4796_v46 = vld [vmem:[#allocation2 + $0xab4] sm:$0xf0] }
  0x88   :  { %2878 = vmatpush.bf16.msrb.mxu2 %v4099_v51  ;;  %v4639_v51 = vor.u32 %v5342_v41, %v4636_v42  ;;  %v4799_v54 = vor.u32 %v5382_v45, %v4796_v46  ;;  %v3742_v42 = vld [vmem:[#allocation2 + $0x260] sm:$0xf] }
  0x89   :  { %2892 = vmatpush.bf16.msrb.mxu3 %v4259_v55  ;;  %v5337_v55 = vld [vmem:[#allocation2 + $0x93c] sm:$0xf]  ;;  %v3902_v45 = vld [vmem:[#allocation2 + $0x3a0] sm:$0xf] }
  0x8a   :  { %2851 = vmatpush.bf16.msrb.mxu0 %v3759_v59  ;;  %v4776_v59 = vld [vmem:[#allocation2 + $0xa8c] sm:$0xf0] }
  0x8b   :  { %2865 = vmatpush.bf16.msrb.mxu1 %v3919_v0  ;;  %v4619_v0 = vor.u32 %v5337_v55, %v4616_v56  ;;  %v4779_v4 = vor.u32 %v5377_v58, %v4776_v59  ;;  %v4719_v55 = vor.u32 %v5362_v34, %v4716_v37  ;;  %v4879_v58 = vor.u32 %v5402_v49, %v4876_v50  ;;  %v3562_v59 = vld [vmem:[#allocation2 + $0xf8] sm:$0xf]  ;;  %v5180_v49 = vld [vmem:[#allocation2 + $0x450] sm:$0xf0] }
  0x8c   :  { %2879 = vmatpush.bf16.msrb.mxu2 %v4079_v5  ;;  %v5332_v5 = vld [vmem:[#allocation2 + $0x914] sm:$0xf] }
  0x8d   :  { %2893 = vmatpush.bf16.msrb.mxu3 %v4239_v11  ;;  %2852 = vmatmul.bf16.vlgmr.msrb.gmra.mxu0 %v5543_v2 }
  0x8e   :  { %2900 = vmatpush.bf16.msra.mxu0 %v4539_v1  ;;  %2866 = vmatmul.bf16.vlgmr.msrb.gmra.mxu1 %v5561_v14  ;;  %v5292_v1 = vld [vmem:[#allocation2 + $0x7d4] sm:$0xf] }
  0x8f   :  { %2914 = vmatpush.bf16.msra.mxu1 %v4699_v6  ;;  %2880 = vmatmul.bf16.vlgmr.msrb.gmra.mxu2 %v5586_v36  ;;  %v4596_v6 = vld [vmem:[#allocation2 + $0x924] sm:$0xf0]  ;;  %v4439_v11 = vor.u32 %v5292_v1, %v4436_v3  ;;  %v3882_v1 = vld [vmem:[#allocation2 + $0x378] sm:$0xf]  ;;  %v5155_v3 = vld [vmem:[#allocation2 + $0x388] sm:$0xf0] }
  0x90   :  { %2928 = vmatpush.bf16.msra.mxu2 %v4859_v10  ;;  %2894 = vmatmul.bf16.vlgmr.msrb.gmra.mxu3 %v5593_v44  ;;  %v4756_v10 = vld [vmem:[#allocation2 + $0xa64] sm:$0xf0] }
  0x91   :  { %2942 = vmatpush.bf16.msra.mxu3 %v5019_v15  ;;  %v4599_v15 = vor.u32 %v5332_v5, %v4596_v6  ;;  %v5195_v5 = vld [vmem:[#allocation2 + $0x4c8] sm:$0xf0] }
  0x92   :  { %2901 = vmatpush.bf16.msra.mxu0 %v4519_v18  ;;  %v4759_v18 = vor.u32 %v5372_v9, %v4756_v10  ;;  %v3883_v9 = vor.u32 %v5155_v3, %v3882_v1  ;;  %v3542_v10 = vld [vmem:[#allocation2 + $0xd0] sm:$0xf] }
  0x93   :  { %2915 = vmatpush.bf16.msra.mxu1 %v4679_v21  ;;  %v4919_v21 = vor.u32 %v5412_v12, %v4916_v13  ;;  %v3702_v12 = vld [vmem:[#allocation2 + $0x210] sm:$0xf] }
  0x94   :  { %2929 = vmatpush.bf16.msra.mxu2 %v4839_v24  ;;  %v5407_v24 = vld [vmem:[#allocation2 + $0xb6c] sm:$0xf]  ;;  %v3462_v3 = vld [vmem:[#allocation2 + $0x30] sm:$0xf] }
  0x95   :  { %2943 = vmatpush.bf16.msra.mxu3 %v4999_v28  ;;  %v5282_v28 = vld [vmem:[#allocation2 + $0x784] sm:$0xf]  ;;  %v4899_v41 = vor.u32 %v5407_v24, %v4896_v26  ;;  %v5065_v24 = vld [vmem:[#allocation2 + $0xb8] sm:$0xf0] }
  0x96   :  { %2902 = vmatpush.bf16.msra.mxu0 %v4499_v32  ;;  %v5322_v32 = vld [vmem:[#allocation2 + $0x8c4] sm:$0xf]  ;;  %v4399_v46 = vor.u32 %v5282_v28, %v4396_v29  ;;  %v5105_v28 = vld [vmem:[#allocation2 + $0x1f8] sm:$0xf0]  ;;  %v3842_v29 = vld [vmem:[#allocation2 + $0x328] sm:$0xf] }
  0x97   :  { %2916 = vmatpush.bf16.msra.mxu1 %v4659_v35  ;;  %v4739_v35 = vor.u32 %v5367_v22, %v4736_v23  ;;  %v3863_v22 = vor.u32 %v5150_v17, %v3862_v16  ;;  %v3522_v23 = vld [vmem:[#allocation2 + $0xa8] sm:$0xf]  ;;  %v5045_v16 = vld [vmem:[#allocation2 + $0x18] sm:$0xf0] }
  0x98   :  { %2930 = vmatpush.bf16.msra.mxu2 %v4819_v39  ;;  %v5080_v39 = vld [vmem:[#allocation2 + $0x130] sm:$0xf0]  ;;  %v3523_v34 = vor.u32 %v5065_v24, %v3522_v23  ;;  %v5125_v23 = vld [vmem:[#allocation2 + $0x298] sm:$0xf0]  ;;  %v4222_v24 = vld [vmem:[#allocation2 + $0x620] sm:$0xf] }
  0x99   :  { %2944 = vmatpush.bf16.msra.mxu3 %v4979_v43  ;;  %v5120_v43 = vld [vmem:[#allocation2 + $0x270] sm:$0xf0]  ;;  %v3583_v52 = vor.u32 %v5080_v39, %v3582_v38  ;;  %v3502_v38 = vld [vmem:[#allocation2 + $0x80] sm:$0xf] }
  0x9a   :  { %2903 = vmatpush.bf16.msra.mxu0 %v4479_v47  ;;  %v5160_v47 = vld [vmem:[#allocation2 + $0x3b0] sm:$0xf0]  ;;  %v3743_v56 = vor.u32 %v5120_v43, %v3742_v42 }
  0x9b   :  { %2917 = vmatpush.bf16.msra.mxu1 %v4639_v51  ;;  %v4559_v51 = vor.u32 %v5322_v32, %v4556_v33  ;;  %v4002_v32 = vld [vmem:[#allocation2 + $0x468] sm:$0xf]  ;;  %v5185_v33 = vld [vmem:[#allocation2 + $0x478] sm:$0xf0]  ;;  %v5060_v39 = vld [vmem:[#allocation2 + $0x90] sm:$0xf0] }
  0x9c   :  { %2931 = vmatpush.bf16.msra.mxu2 %v4799_v54  ;;  %v5200_v54 = vld [vmem:[#allocation2 + $0x4f0] sm:$0xf0]  ;;  %v4003_v42 = vor.u32 %v5185_v33, %v4002_v32  ;;  %v3503_v50 = vor.u32 %v5060_v39, %v3502_v38  ;;  %v3922_v33 = vld [vmem:[#allocation2 + $0x3c8] sm:$0xf]  ;;  %v4702_v38 = vld [vmem:[#allocation2 + $0x9e0] sm:$0xf] }
  0x9d   :  { %2945 = vmatpush.bf16.msra.mxu3 %v4959_v57  ;;  %v3903_v57 = vor.u32 %v5160_v47, %v3902_v45  ;;  %v4063_v63 = vor.u32 %v5200_v54, %v4062_v53  ;;  %v5100_v43 = vld [vmem:[#allocation2 + $0x1d0] sm:$0xf0]  ;;  %v3822_v45 = vld [vmem:[#allocation2 + $0x300] sm:$0xf]  ;;  %v3482_v53 = vld [vmem:[#allocation2 + $0x58] sm:$0xf] }
  0x9e   :  { %2904 = vmatpush.bf16.msra.mxu0 %v4459_v61  ;;  %v5075_v61 = vld [vmem:[#allocation2 + $0x108] sm:$0xf0]  ;;  %v3982_v47 = vld [vmem:[#allocation2 + $0x440] sm:$0xf]  ;;  %v5320_v32 = vld [vmem:[#allocation2 + $0x8b0] sm:$0xf0] }
  0x9f   :  { %2918 = vmatpush.bf16.msra.mxu1 %v4619_v0  ;;  %v5115_v0 = vld [vmem:[#allocation2 + $0x248] sm:$0xf0]  ;;  %v3563_v6 = vor.u32 %v5075_v61, %v3562_v59  ;;  %v3962_v61 = vld [vmem:[#allocation2 + $0x418] sm:$0xf]  ;;  %v5360_v39 = vld [vmem:[#allocation2 + $0x9f0] sm:$0xf0] }
  0xa0   :  { %2932 = vmatpush.bf16.msra.mxu2 %v4779_v4  ;;  %v4042_v4 = vld [vmem:[#allocation2 + $0x4b8] sm:$0xf]  ;;  %v5055_v54 = vld [vmem:[#allocation2 + $0x68] sm:$0xf0] }
  0xa1   :  { %2946 = vmatpush.bf16.msra.mxu3 %v4939_v7  ;;  %v3723_v7 = vor.u32 %v5115_v0, %v3722_v62  ;;  %v4043_v13 = vor.u32 %v5195_v5, %v4042_v4  ;;  %v5135_v59 = vld [vmem:[#allocation2 + $0x2e8] sm:$0xf0]  ;;  %v5050_v4 = vld [vmem:[#allocation2 + $0x40] sm:$0xf0]  ;;  %v3622_v5 = vld [vmem:[#allocation2 + $0x170] sm:$0xf] }
  0xa2   :  { %2905 = vmatpush.bf16.msra.mxu0 %v4439_v11  ;;  %v5070_v11 = vld [vmem:[#allocation2 + $0xe0] sm:$0xf0]  ;;  %v5175_v62 = vld [vmem:[#allocation2 + $0x428] sm:$0xf0] }
  0xa3   :  { %2919 = vmatpush.bf16.msra.mxu1 %v4599_v15  ;;  %v5110_v15 = vld [vmem:[#allocation2 + $0x220] sm:$0xf0]  ;;  %v3543_v20 = vor.u32 %v5070_v11, %v3542_v10  ;;  %v3942_v11 = vld [vmem:[#allocation2 + $0x3f0] sm:$0xf] }
  0xa4   :  { %2933 = vmatpush.bf16.msra.mxu2 %v4759_v18  ;;  %v4022_v18 = vld [vmem:[#allocation2 + $0x490] sm:$0xf]  ;;  %v5130_v10 = vld [vmem:[#allocation2 + $0x2c0] sm:$0xf0] }
  0xa5   :  { %2947 = vmatpush.bf16.msra.mxu3 %v4919_v21  ;;  %v3703_v21 = vor.u32 %v5110_v15, %v3702_v12  ;;  %v4023_v26 = vor.u32 %v5190_v19, %v4022_v18  ;;  %v5170_v12 = vld [vmem:[#allocation2 + $0x400] sm:$0xf0]  ;;  %v3442_v15 = vld [vmem:[#allocation2 + $0x8] sm:$0xf] }
  0xa6   :  { %2906 = vmatpush.bf16.msra.mxu0 %v4419_v25  ;;  %v3682_v25 = vld [vmem:[#allocation2 + $0x1e8] sm:$0xf] }
  0xa7   :  { %2920 = vmatpush.bf16.msra.mxu1 %v4579_v30  ;;  %v5145_v30 = vld [vmem:[#allocation2 + $0x338] sm:$0xf0]  ;;  %v3602_v19 = vld [vmem:[#allocation2 + $0x148] sm:$0xf] }
  0xa8   :  { %2934 = vmatpush.bf16.msra.mxu2 %v4739_v35  ;;  %v3683_v35 = vor.u32 %v5105_v28, %v3682_v25  ;;  %v3843_v37 = vor.u32 %v5145_v30, %v3842_v29  ;;  %v5240_v25 = vld [vmem:[#allocation2 + $0x630] sm:$0xf0]  ;;  %v4542_v29 = vld [vmem:[#allocation2 + $0x8a0] sm:$0xf]  ;;  %v3443_v30 = vor.u32 %v5045_v16, %v3442_v15  ;;  %v5225_v15 = vld [vmem:[#allocation2 + $0x5b8] sm:$0xf0] }
  0xa9   :  { %2948 = vmatpush.bf16.msra.mxu3 %v4899_v41  ;;  %v3662_v41 = vld [vmem:[#allocation2 + $0x1c0] sm:$0xf]  ;;  %v5280_v28 = vld [vmem:[#allocation2 + $0x770] sm:$0xf0]  ;;  %v4322_v16 = vld [vmem:[#allocation2 + $0x6e8] sm:$0xf] }
  0xaa   :  { %2907 = vmatpush.bf16.msra.mxu0 %v4399_v46  ;;  %v5140_v46 = vld [vmem:[#allocation2 + $0x310] sm:$0xf0] }
  0xab   :  { %2921 = vmatpush.bf16.msra.mxu1 %v4559_v51  ;;  %v3663_v51 = vor.u32 %v5100_v43, %v3662_v41  ;;  %v4223_v41 = vor.u32 %v5240_v25, %v4222_v24  ;;  %v4202_v43 = vld [vmem:[#allocation2 + $0x5f8] sm:$0xf] }
  0xac   :  { %2935 = vmatpush.bf16.msra.mxu2 %v4719_v55  ;;  %v3642_v55 = vld [vmem:[#allocation2 + $0x198] sm:$0xf] }
  0xad   :  { %2949 = vmatpush.bf16.msra.mxu3 %v4879_v58  ;;  %2908 = vmatmul.bf16.vlgmr.msra.gmra.mxu0 %v5591_v40  ;;  %v3802_v58 = vld [vmem:[#allocation2 + $0x2d8] sm:$0xf] }
  0xae   :  { %2956 = vmatpush.bf16.msrb.mxu0 %v3583_v52  ;;  %2922 = vmatmul.bf16.vlgmr.msra.gmra.mxu1 %v5595_v48  ;;  %v3823_v52 = vor.u32 %v5140_v46, %v3822_v45  ;;  %v3803_v1 = vor.u32 %v5135_v59, %v3802_v58  ;;  %v4543_v45 = vor.u32 %v5320_v32, %v4542_v29  ;;  %v4182_v58 = vld [vmem:[#allocation2 + $0x5d0] sm:$0xf]  ;;  %v2685_v59 = vpop.f32.mrf.mxu0  ;;  %v4302_v32 = vld [vmem:[#allocation2 + $0x6c0] sm:$0xf] }
  0xaf   :  { %2970 = vmatpush.bf16.msrb.mxu1 %v3743_v56  ;;  %2936 = vmatmul.bf16.vlgmr.msra.gmra.mxu2 %v5613_v27  ;;  %v3983_v56 = vor.u32 %v5180_v49, %v3982_v47  ;;  %v5235_v47 = vld [vmem:[#allocation2 + $0x608] sm:$0xf0]  ;;  %v4362_v49 = vld [vmem:[#allocation2 + $0x738] sm:$0xf] }
  0xb0   :  { %2984 = vmatpush.bf16.msrb.mxu2 %v3903_v57  ;;  %2950 = vmatmul.bf16.vlgmr.msra.gmra.mxu3 %v5615_v31  ;;  %v5095_v57 = vld [vmem:[#allocation2 + $0x1a8] sm:$0xf0] }
  0xb1   :  { %2998 = vmatpush.bf16.msrb.mxu3 %v4063_v63  ;;  %v3483_v63 = vor.u32 %v5055_v54, %v3482_v53  ;;  %v3643_v0 = vor.u32 %v5095_v57, %v3642_v55  ;;  %v5315_v53 = vld [vmem:[#allocation2 + $0x888] sm:$0xf0]  ;;  %v4682_v54 = vld [vmem:[#allocation2 + $0x9b8] sm:$0xf] }
  0xb2   :  { %2957 = vmatpush.bf16.msrb.mxu0 %v3563_v6  ;;  %v3963_v6 = vor.u32 %v5175_v62, %v3962_v61  ;;  %v5355_v55 = vld [vmem:[#allocation2 + $0x9c8] sm:$0xf0]  ;;  %v5230_v62 = vld [vmem:[#allocation2 + $0x5e0] sm:$0xf0] }
  0xb3   :  { %2971 = vmatpush.bf16.msrb.mxu1 %v3723_v7  ;;  %v5090_v7 = vld [vmem:[#allocation2 + $0x180] sm:$0xf0] }
  0xb4   :  { %2985 = vmatpush.bf16.msrb.mxu2 %v3883_v9  ;;  %v3782_v9 = vld [vmem:[#allocation2 + $0x2b0] sm:$0xf]  ;;  %v3623_v17 = vor.u32 %v5090_v7, %v3622_v5  ;;  %v5310_v5 = vld [vmem:[#allocation2 + $0x860] sm:$0xf0] }
  0xb5   :  { %2999 = vmatpush.bf16.msrb.mxu3 %v4043_v13  ;;  %v3463_v13 = vor.u32 %v5050_v4, %v3462_v3  ;;  %v3783_v18 = vor.u32 %v5130_v10, %v3782_v9  ;;  %v4683_v3 = vor.u32 %v5355_v55, %v4682_v54  ;;  %v4502_v4 = vld [vmem:[#allocation2 + $0x850] sm:$0xf]  ;;  %v5350_v9 = vld [vmem:[#allocation2 + $0x9a0] sm:$0xf0]  ;;  %v4183_v10 = vor.u32 %v5230_v62, %v4182_v58  ;;  %v4602_v58 = vld [vmem:[#allocation2 + $0x918] sm:$0xf] }
  0xb6   :  { %2958 = vmatpush.bf16.msrb.mxu0 %v3543_v20  ;;  %v5085_v20 = vld [vmem:[#allocation2 + $0x158] sm:$0xf0]  ;;  %v4662_v7 = vld [vmem:[#allocation2 + $0x990] sm:$0xf] }
  0xb7   :  { %2972 = vmatpush.bf16.msrb.mxu1 %v3703_v21  ;;  %v3762_v21 = vld [vmem:[#allocation2 + $0x288] sm:$0xf] }
  0xb8   :  { %2986 = vmatpush.bf16.msrb.mxu2 %v3863_v22  ;;  %v3943_v22 = vor.u32 %v5170_v12, %v3942_v11  ;;  %v4162_v12 = vld [vmem:[#allocation2 + $0x5a8] sm:$0xf] }
  0xb9   :  { %3000 = vmatpush.bf16.msrb.mxu3 %v4023_v26  ;;  %v4382_v26 = vld [vmem:[#allocation2 + $0x760] sm:$0xf]  ;;  %v4163_v24 = vor.u32 %v5225_v15, %v4162_v12  ;;  %v4582_v12 = vld [vmem:[#allocation2 + $0x8f0] sm:$0xf] }
  0xba   :  { %2959 = vmatpush.bf16.msrb.mxu0 %v3523_v34  ;;  %v5165_v34 = vld [vmem:[#allocation2 + $0x3d8] sm:$0xf0] }
  0xbb   :  { %2973 = vmatpush.bf16.msrb.mxu1 %v3683_v35  ;;  %v3603_v35 = vor.u32 %v5085_v20, %v3602_v19  ;;  %v3923_v46 = vor.u32 %v5165_v34, %v3922_v33  ;;  %v4663_v19 = vor.u32 %v5350_v9, %v4662_v7  ;;  %v4482_v20 = vld [vmem:[#allocation2 + $0x828] sm:$0xf]  ;;  %v5260_v33 = vld [vmem:[#allocation2 + $0x6d0] sm:$0xf0] }
  0xbc   :  { %2987 = vmatpush.bf16.msrb.mxu2 %v3843_v37  ;;  %v3763_v37 = vor.u32 %v5125_v23, %v3762_v21  ;;  %v5305_v21 = vld [vmem:[#allocation2 + $0x838] sm:$0xf0] }
  0xbd   :  { %3001 = vmatpush.bf16.msrb.mxu3 %v4003_v42  ;;  %v4383_v42 = vor.u32 %v5280_v28, %v4382_v26  ;;  %v5345_v23 = vld [vmem:[#allocation2 + $0x978] sm:$0xf0]  ;;  %v4142_v26 = vld [vmem:[#allocation2 + $0x580] sm:$0xf]  ;;  %v2713_v28 = vpop.f32.mrf.mxu2  ;;  %v4483_v29 = vor.u32 %v5305_v21, %v4482_v20  ;;  %v4242_v20 = vld [vmem:[#allocation2 + $0x648] sm:$0xf] }
  0xbe   :  { %2960 = vmatpush.bf16.msrb.mxu0 %v3503_v50  ;;  %v5275_v50 = vld [vmem:[#allocation2 + $0x748] sm:$0xf0] }
  0xbf   :  { %2974 = vmatpush.bf16.msrb.mxu1 %v3663_v51  ;;  %v4703_v51 = vor.u32 %v5360_v39, %v4702_v38  ;;  %v4363_v57 = vor.u32 %v5275_v50, %v4362_v49  ;;  %v5300_v38 = vld [vmem:[#allocation2 + $0x810] sm:$0xf0]  ;;  %v2687_v39 = vpop.f32.mrf.mxu0  ;;  %v2727_v49 = vpop.f32.mrf.mxu3 }
  0xc0   :  { %2988 = vmatpush.bf16.msrb.mxu2 %v3823_v52  ;;  %v4522_v52 = vld [vmem:[#allocation2 + $0x878] sm:$0xf] }
  0xc1   :  { %3002 = vmatpush.bf16.msrb.mxu3 %v3983_v56  ;;  %v4203_v56 = vor.u32 %v5235_v47, %v4202_v43  ;;  %v4523_v61 = vor.u32 %v5315_v53, %v4522_v52  ;;  %v4122_v47 = vld [vmem:[#allocation2 + $0x558] sm:$0xf]  ;;  %v5255_v53 = vld [vmem:[#allocation2 + $0x6a8] sm:$0xf0] }
  0xc2   :  { %2961 = vmatpush.bf16.msrb.mxu0 %v3483_v63  ;;  %v4342_v63 = vld [vmem:[#allocation2 + $0x710] sm:$0xf]  ;;  %v4282_v52 = vld [vmem:[#allocation2 + $0x698] sm:$0xf] }
  0xc3   :  { %2975 = vmatpush.bf16.msrb.mxu1 %v3643_v0  ;;  %v5270_v0 = vld [vmem:[#allocation2 + $0x720] sm:$0xf0]  ;;  %v4283_v62 = vor.u32 %v5255_v53, %v4282_v52 }
  0xc4   :  { %2989 = vmatpush.bf16.msrb.mxu2 %v3803_v1  ;;  %v2699_v1 = vpop.f32.mrf.mxu1  ;;  %v4343_v11 = vor.u32 %v5270_v0, %v4342_v63  ;;  %v4102_v63 = vld [vmem:[#allocation2 + $0x530] sm:$0xf] }
  0xc5   :  { %3003 = vmatpush.bf16.msrb.mxu3 %v3963_v6  ;;  %v5630_v6 = vld [vmem:[#allocation4] sm:$0x1f] }
  0xc6   :  { %2962 = vmatpush.bf16.msrb.mxu0 %v3463_v13  ;;  %v4503_v13 = vor.u32 %v5310_v5, %v4502_v4  ;;  %v4262_v4 = vld [vmem:[#allocation2 + $0x670] sm:$0xf]  ;;  %v5250_v5 = vld [vmem:[#allocation2 + $0x680] sm:$0xf0] }
  0xc7   :  { %2976 = vmatpush.bf16.msrb.mxu1 %v3623_v17  ;;  %v5265_v17 = vld [vmem:[#allocation2 + $0x6f8] sm:$0xf0] }
  0xc8   :  { %2990 = vmatpush.bf16.msrb.mxu2 %v3783_v18  ;;  %v536_v18 = vperm.slane %v5630_v6, 0  ;;  %v4323_v25 = vor.u32 %v5265_v17, %v4322_v16  ;;  %v4263_v16 = vor.u32 %v5250_v5, %v4262_v4  ;;  %v4082_v17 = vld [vmem:[#allocation2 + $0x508] sm:$0xf]  ;;  %v5113_v4 = vld [vmem:[#allocation2 + $0x23c] sm:$0xf] }
  0xc9   :  { %3004 = vmatpush.bf16.msrb.mxu3 %v3943_v22  ;;  %v4642_v22 = vld [vmem:[#allocation2 + $0x968] sm:$0xf] }
  0xca   :  { %2963 = vmatpush.bf16.msrb.mxu0 %v3443_v30  ;;  %v5220_v30 = vld [vmem:[#allocation2 + $0x590] sm:$0xf0]  ;;  %v2686_v34 = vadd.f32 %v2685_v59, %v536_v18  ;;  %v5335_v59 = vld [vmem:[#allocation2 + $0x928] sm:$0xf0]  ;;  %v2741_v21 = vpop.f32.mrf.mxu0 }
  0xcb   :  { %2977 = vmatpush.bf16.msrb.mxu1 %v3603_v35  ;;  %v4643_v35 = vor.u32 %v5345_v23, %v4642_v22  ;;  %v4603_v9 = vor.u32 %v5335_v59, %v4602_v58  ;;  %v5245_v23 = vld [vmem:[#allocation2 + $0x658] sm:$0xf0]  ;;  %v5002_v58 = vld [vmem:[#allocation2 + $0xc38] sm:$0xf]  ;;  %v5435_v59 = vld [vmem:[#allocation2 + $0xc48] sm:$0xf0] }
  0xcc   :  { %2991 = vmatpush.bf16.msrb.mxu2 %v3763_v37  ;;  %v4462_v37 = vld [vmem:[#allocation2 + $0x800] sm:$0xf]  ;;  %v5638_v43 = vpop.f32.mrf.mxu1  ;;  %v2700_v54 = vadd.f32 %v2699_v1, %v2686_v34  ;;  %v4422_v1 = vld [vmem:[#allocation2 + $0x7b0] sm:$0xf] }
  0xcd   :  { %3005 = vmatpush.bf16.msrb.mxu3 %v3923_v46  ;;  %2964 = vmatmul.bf16.vlgmr.msrb.gmra.mxu0 %v5538_v60  ;;  %v4303_v46 = vor.u32 %v5260_v33, %v4302_v32  ;;  %v4463_v50 = vor.u32 %v5300_v38, %v4462_v37  ;;  %v4862_v32 = vld [vmem:[#allocation2 + $0xb20] sm:$0xf]  ;;  %v5400_v33 = vld [vmem:[#allocation2 + $0xb30] sm:$0xf0]  ;;  %v5078_v38 = vld [vmem:[#allocation2 + $0x124] sm:$0xf] }
  0xce   :  { %3012 = vmatpush.bf16.msra.mxu0 %v4223_v41  ;;  %2978 = vmatmul.bf16.vlgmr.msrb.gmra.mxu1 %v5553_v8  ;;  %v4622_v41 = vld [vmem:[#allocation2 + $0x940] sm:$0xf]  ;;  %v2714_v7 = vadd.f32 %v2713_v28, %v2700_v54  ;;  %v5440_v37 = vld [vmem:[#allocation2 + $0xc70] sm:$0xf0] }
  0xcf   :  { %3026 = vmatpush.bf16.msra.mxu1 %v4383_v42  ;;  %2992 = vmatmul.bf16.vlgmr.msrb.gmra.mxu2 %v5543_v2  ;;  %v5340_v42 = vld [vmem:[#allocation2 + $0x950] sm:$0xf0]  ;;  %v5022_v34 = vld [vmem:[#allocation2 + $0xc60] sm:$0xf] }
  0xd0   :  { %3040 = vmatpush.bf16.msra.mxu2 %v4543_v45  ;;  %3006 = vmatmul.bf16.vlgmr.msrb.gmra.mxu3 %v5561_v14  ;;  %v4143_v45 = vor.u32 %v5220_v30, %v4142_v26  ;;  %v4623_v55 = vor.u32 %v5340_v42, %v4622_v41  ;;  %v2688_v26 = vadd.f32 %v2687_v39, %v536_v18  ;;  %v3584_v41 = vld [vmem:[#allocation2 + $0x134] sm:$0xf0]  ;;  %v5118_v39 = vld [vmem:[#allocation2 + $0x264] sm:$0xf] }
  0xd1   :  { %3054 = vmatpush.bf16.msra.mxu3 %v4703_v51  ;;  %v5215_v51 = vld [vmem:[#allocation2 + $0x568] sm:$0xf0]  ;;  %v2728_v28 = vadd.f32 %v2727_v49, %v2714_v7  ;;  %v4863_v18 = vor.u32 %v5400_v33, %v4862_v32  ;;  %v3744_v49 = vld [vmem:[#allocation2 + $0x274] sm:$0xf0]  ;;  %v5023_v53 = vor.u32 %v5440_v37, %v5022_v34  ;;  %v3587_v54 = vor.u32 %v5078_v38, %v3584_v41  ;;  %v4962_v33 = vld [vmem:[#allocation2 + $0xbe8] sm:$0xf] }
  0xd2   :  { %3013 = vmatpush.bf16.msra.mxu0 %v4203_v56  ;;  %v4442_v56 = vld [vmem:[#allocation2 + $0x7d8] sm:$0xf]  ;;  %v5425_v34 = vld [vmem:[#allocation2 + $0xbf8] sm:$0xf0]  ;;  %v5063_v41 = vld [vmem:[#allocation2 + $0xac] sm:$0xf] }
  0xd3   :  { %3027 = vmatpush.bf16.msra.mxu1 %v4363_v57  ;;  %v5295_v57 = vld [vmem:[#allocation2 + $0x7e8] sm:$0xf0]  ;;  %v2742_v52 = vadd.f32 %v2741_v21, %v2728_v28 }
  0xd4   :  { %3041 = vmatpush.bf16.msra.mxu2 %v4523_v61  ;;  %v4123_v61 = vor.u32 %v5215_v51, %v4122_v47  ;;  %v4443_v0 = vor.u32 %v5295_v57, %v4442_v56  ;;  %v5325_v47 = vld [vmem:[#allocation2 + $0x8d8] sm:$0xf0]  ;;  %v2702_v51 = vadd.f32 %v5638_v43, %v2688_v26  ;;  %v5395_v56 = vld [vmem:[#allocation2 + $0xb08] sm:$0xf0]  ;;  %v3724_v43 = vld [vmem:[#allocation2 + $0x24c] sm:$0xf0] }
  0xd5   :  { %3055 = vmatpush.bf16.msra.mxu3 %v4683_v3  ;;  %v5210_v3 = vld [vmem:[#allocation2 + $0x540] sm:$0xf0] }
  0xd6   :  { %3014 = vmatpush.bf16.msra.mxu0 %v4183_v10  ;;  %v5290_v10 = vld [vmem:[#allocation2 + $0x7c0] sm:$0xf0]  ;;  %v4103_v15 = vor.u32 %v5210_v3, %v4102_v63  ;;  %v3564_v63 = vld [vmem:[#allocation2 + $0x10c] sm:$0xf0] }
  0xd7   :  { %3028 = vmatpush.bf16.msra.mxu1 %v4343_v11  ;;  %v2715_v11 = vpop.f32.mrf.mxu2  ;;  %v4423_v22 = vor.u32 %v5290_v10, %v4422_v1  ;;  %v4822_v1 = vld [vmem:[#allocation2 + $0xad0] sm:$0xf]  ;;  %v5390_v10 = vld [vmem:[#allocation2 + $0xae0] sm:$0xf0] }
  0xd8   :  { %3042 = vmatpush.bf16.msra.mxu2 %v4503_v13  ;;  %v5330_v13 = vld [vmem:[#allocation2 + $0x900] sm:$0xf0]  ;;  %v2716_v5 = vadd.f32 %v2715_v11, %v2702_v51  ;;  %v3544_v11 = vld [vmem:[#allocation2 + $0xe4] sm:$0xf0] }
  0xd9   :  { %3056 = vmatpush.bf16.msra.mxu3 %v4663_v19  ;;  %v5205_v19 = vld [vmem:[#allocation2 + $0x518] sm:$0xf0]  ;;  %v4583_v30 = vor.u32 %v5330_v13, %v4582_v12  ;;  %v2743_v12 = vpop.f32.mrf.mxu0 }
  0xda   :  { %3015 = vmatpush.bf16.msra.mxu0 %v4163_v24  ;;  %v4402_v24 = vld [vmem:[#allocation2 + $0x788] sm:$0xf]  ;;  %v4083_v42 = vor.u32 %v5205_v19, %v4082_v17  ;;  %v3727_v19 = vor.u32 %v5113_v4, %v3724_v43 }
  0xdb   :  { %3029 = vmatpush.bf16.msra.mxu1 %v4323_v25  ;;  %v5285_v25 = vld [vmem:[#allocation2 + $0x798] sm:$0xf0] }
  0xdc   :  { %3043 = vmatpush.bf16.msra.mxu2 %v4483_v29  ;;  %v2755_v29 = vpop.f32.mrf.mxu1 }
  0xdd   :  { %3057 = vmatpush.bf16.msra.mxu3 %v4643_v35  ;;  %v2729_v35 = vpop.f32.mrf.mxu3  ;;  %v2756_v7 = vadd.f32 %v2755_v29, %v2742_v52  ;;  %v4802_v29 = vld [vmem:[#allocation2 + $0xaa8] sm:$0xf] }
  0xde   :  { %3016 = vmatpush.bf16.msra.mxu0 %v4143_v45  ;;  %v4243_v45 = vor.u32 %v5245_v23, %v4242_v20  ;;  %v5068_v20 = vld [vmem:[#allocation2 + $0xd4] sm:$0xf] }
  0xdf   :  { %3030 = vmatpush.bf16.msra.mxu1 %v4303_v46  ;;  %v4562_v46 = vld [vmem:[#allocation2 + $0x8c8] sm:$0xf]  ;;  %v5108_v23 = vld [vmem:[#allocation2 + $0x214] sm:$0xf]  ;;  %v3547_v32 = vor.u32 %v5068_v20, %v3544_v11  ;;  %v3644_v20 = vld [vmem:[#allocation2 + $0x1ac] sm:$0xf0] }
  0xe0   :  { %3044 = vmatpush.bf16.msra.mxu2 %v4463_v50  ;;  %v4403_v50 = vor.u32 %v5285_v25, %v4402_v24  ;;  %v4563_v57 = vor.u32 %v5325_v47, %v4562_v46  ;;  %v3704_v24 = vld [vmem:[#allocation2 + $0x224] sm:$0xf0]  ;;  %v2730_v25 = vadd.f32 %v2729_v35, %v2716_v5  ;;  %v5103_v46 = vld [vmem:[#allocation2 + $0x1ec] sm:$0xf]  ;;  %v3684_v35 = vld [vmem:[#allocation2 + $0x1fc] sm:$0xf0] }
  0xe1   :  { %3058 = vmatpush.bf16.msra.mxu3 %v4623_v55  ;;  %v4842_v55 = vld [vmem:[#allocation2 + $0xaf8] sm:$0xf]  ;;  %v3707_v38 = vor.u32 %v5108_v23, %v3704_v24  ;;  %v5370_v23 = vld [vmem:[#allocation2 + $0xa40] sm:$0xf0] }
  0xe2   :  { %3017 = vmatpush.bf16.msra.mxu0 %v4123_v61  ;;  %v3747_v61 = vor.u32 %v5118_v39, %v3744_v49  ;;  %v4843_v3 = vor.u32 %v5395_v56, %v4842_v55  ;;  %v2744_v37 = vadd.f32 %v2743_v12, %v2730_v25  ;;  %v5380_v39 = vld [vmem:[#allocation2 + $0xa90] sm:$0xf0]  ;;  %v4762_v5 = vld [vmem:[#allocation2 + $0xa58] sm:$0xf]  ;;  %v5415_v12 = vld [vmem:[#allocation2 + $0xba8] sm:$0xf0] }
  0xe3   :  { %3031 = vmatpush.bf16.msra.mxu1 %v4283_v62  ;;  %v5073_v62 = vld [vmem:[#allocation2 + $0xfc] sm:$0xf] }
  0xe4   :  { %3045 = vmatpush.bf16.msra.mxu2 %v4443_v0  ;;  %v2769_v0 = vpop.f32.mrf.mxu2  ;;  %v3567_v13 = vor.u32 %v5073_v62, %v3564_v63  ;;  %v2757_v17 = vpop.f32.mrf.mxu1  ;;  %v5098_v63 = vld [vmem:[#allocation2 + $0x1c4] sm:$0xf] }
  0xe5   :  { %3059 = vmatpush.bf16.msra.mxu3 %v4603_v9  ;;  %v5003_v9 = vor.u32 %v5435_v59, %v5002_v58  ;;  %v2783_v21 = vpop.f32.mrf.mxu3  ;;  %v2770_v26 = vadd.f32 %v2769_v0, %v2756_v7  ;;  %v2758_v55 = vadd.f32 %v2757_v17, %v2744_v37  ;;  %v3687_v58 = vor.u32 %v5103_v46, %v3684_v35  ;;  %v5058_v59 = vld [vmem:[#allocation2 + $0x84] sm:$0xf]  ;;  %v3664_v0 = vld [vmem:[#allocation2 + $0x1d4] sm:$0xf0]  ;;  %v5375_v7 = vld [vmem:[#allocation2 + $0xa68] sm:$0xf0] }
  0xe6   :  { %3018 = vmatpush.bf16.msra.mxu0 %v4103_v15  ;;  %v4982_v15 = vld [vmem:[#allocation2 + $0xc10] sm:$0xf]  ;;  %v4763_v17 = vor.u32 %v5375_v7, %v4762_v5  ;;  %v5088_v37 = vld [vmem:[#allocation2 + $0x174] sm:$0xf]  ;;  %v4882_v46 = vld [vmem:[#allocation2 + $0xb48] sm:$0xf] }
  0xe7   :  { %3032 = vmatpush.bf16.msra.mxu1 %v4263_v16  ;;  %v5430_v16 = vld [vmem:[#allocation2 + $0xc20] sm:$0xf0]  ;;  %v2784_v47 = vadd.f32 %v2783_v21, %v2770_v26  ;;  %v4902_v26 = vld [vmem:[#allocation2 + $0xb70] sm:$0xf]  ;;  %v5153_v5 = vld [vmem:[#allocation2 + $0x37c] sm:$0xf] }
  0xe8   :  { %3046 = vmatpush.bf16.msra.mxu2 %v4423_v22  ;;  %v4823_v22 = vor.u32 %v5390_v10, %v4822_v1  ;;  %v4983_v28 = vor.u32 %v5430_v16, %v4982_v15  ;;  %v4922_v10 = vld [vmem:[#allocation2 + $0xb98] sm:$0xf]  ;;  %v5053_v15 = vld [vmem:[#allocation2 + $0x5c] sm:$0xf]  ;;  %v3484_v16 = vld [vmem:[#allocation2 + $0x6c] sm:$0xf0] }
  0xe9   :  { %3060 = vmatpush.bf16.msra.mxu3 %v4583_v30  ;;  %v5385_v30 = vld [vmem:[#allocation2 + $0xab8] sm:$0xf0]  ;;  %v4923_v21 = vor.u32 %v5415_v12, %v4922_v10  ;;  %v3487_v25 = vor.u32 %v5053_v15, %v3484_v16  ;;  %v3884_v7 = vld [vmem:[#allocation2 + $0x38c] sm:$0xf0] }
  0xea   :  { %3019 = vmatpush.bf16.msra.mxu0 %v4083_v42  ;;  %v3524_v42 = vld [vmem:[#allocation2 + $0xbc] sm:$0xf0]  ;;  %v2797_v51 = vpop.f32.mrf.mxu0  ;;  %v5193_v10 = vld [vmem:[#allocation2 + $0x4bc] sm:$0xf]  ;;  %v4044_v12 = vld [vmem:[#allocation2 + $0x4cc] sm:$0xf0] }
  0xeb   :  { %3033 = vmatpush.bf16.msra.mxu1 %v4243_v45  ;;  %v4803_v45 = vor.u32 %v5385_v30, %v4802_v29  ;;  %v3527_v52 = vor.u32 %v5063_v41, %v3524_v42  ;;  %v2798_v56 = vadd.f32 %v2797_v51, %v2784_v47  ;;  %v5048_v29 = vld [vmem:[#allocation2 + $0x34] sm:$0xf]  ;;  %v4722_v42 = vld [vmem:[#allocation2 + $0xa08] sm:$0xf]  ;;  %v5158_v51 = vld [vmem:[#allocation2 + $0x3a4] sm:$0xf] }
  0xec   :  { %3047 = vmatpush.bf16.msra.mxu2 %v4403_v50  ;;  %v4963_v50 = vor.u32 %v5425_v34, %v4962_v33  ;;  %v2771_v49 = vpop.f32.mrf.mxu2  ;;  %v3464_v34 = vld [vmem:[#allocation2 + $0x44] sm:$0xf0]  ;;  %v5233_v15 = vld [vmem:[#allocation2 + $0x5fc] sm:$0xf]  ;;  %v4204_v16 = vld [vmem:[#allocation2 + $0x60c] sm:$0xf0] }
  0xed   :  { %3061 = vmatpush.bf16.msra.mxu3 %v4563_v57  ;;  %3020 = vmatmul.bf16.vlgmr.msra.gmra.mxu0 %v5586_v36  ;;  %v2811_v57 = vpop.f32.mrf.mxu1 }
  0xee   :  { %3068 = vmatpush.bf16.msrb.mxu0 %v4863_v18  ;;  %3034 = vmatmul.bf16.vlgmr.msra.gmra.mxu1 %v5593_v44  ;;  %v4782_v18 = vld [vmem:[#allocation2 + $0xa80] sm:$0xf]  ;;  %v2812_v4 = vadd.f32 %v2811_v57, %v2798_v56  ;;  %v5238_v56 = vld [vmem:[#allocation2 + $0x624] sm:$0xf] }
  0xef   :  { %3082 = vmatpush.bf16.msrb.mxu1 %v5023_v53  ;;  %3048 = vmatmul.bf16.vlgmr.msra.gmra.mxu2 %v5591_v40  ;;  %v4942_v53 = vld [vmem:[#allocation2 + $0xbc0] sm:$0xf]  ;;  %v4783_v62 = vor.u32 %v5380_v39, %v4782_v18  ;;  %v5043_v18 = vld [vmem:[#allocation2 + $0xc] sm:$0xf] }
  0xf0   :  { %3096 = vmatpush.bf16.msrb.mxu2 %v3587_v54  ;;  %3062 = vmatmul.bf16.vlgmr.msra.gmra.mxu3 %v5595_v48  ;;  %v5420_v54 = vld [vmem:[#allocation2 + $0xbd0] sm:$0xf0]  ;;  %3376 = vst [vmem:[%s5722_s3] sm:$0xff] %v2812_v4  ;;  %v3444_v39 = vld [vmem:[#allocation2 + $0x1c] sm:$0xf0] }
  0xf1   :  { %3110 = vmatpush.bf16.msrb.mxu3 %v3747_v61  ;;  %v3504_v61 = vld [vmem:[#allocation2 + $0x94] sm:$0xf0]  ;;  %v4943_v43 = vor.u32 %v5420_v54, %v4942_v53  ;;  %v5198_v53 = vld [vmem:[#allocation2 + $0x4e4] sm:$0xf]  ;;  %v3447_v4 = vor.u32 %v5043_v18, %v3444_v39 }
  0xf2   :  { %3069 = vmatpush.bf16.msrb.mxu0 %v4843_v3  ;;  %v2772_v3 = vadd.f32 %v2771_v49, %v2758_v55  ;;  %v3507_v1 = vor.u32 %v5058_v59, %v3504_v61  ;;  %v2799_v24 = vpop.f32.mrf.mxu0  ;;  %v3467_v49 = vor.u32 %v5048_v29, %v3464_v34  ;;  %v4064_v55 = vld [vmem:[#allocation2 + $0x4f4] sm:$0xf0]  ;;  %v5083_v59 = vld [vmem:[#allocation2 + $0x14c] sm:$0xf]  ;;  %v3604_v61 = vld [vmem:[#allocation2 + $0x15c] sm:$0xf0] }
  0xf3   :  { %3083 = vmatpush.bf16.msrb.mxu1 %v5003_v9  ;;  %v2785_v9 = vpop.f32.mrf.mxu3  ;;  %v4184_v29 = vld [vmem:[#allocation2 + $0x5e4] sm:$0xf0] }
  0xf4   :  { %3097 = vmatpush.bf16.msrb.mxu2 %v3567_v13  ;;  %v3667_v13 = vor.u32 %v5098_v63, %v3664_v0  ;;  %v2786_v11 = vadd.f32 %v2785_v9, %v2772_v3  ;;  %v5278_v0 = vld [vmem:[#allocation2 + $0x764] sm:$0xf]  ;;  %v4384_v3 = vld [vmem:[#allocation2 + $0x774] sm:$0xf0] }
  0xf5   :  { %3111 = vmatpush.bf16.msrb.mxu3 %v3727_v19  ;;  %v5093_v19 = vld [vmem:[#allocation2 + $0x19c] sm:$0xf] }
  0xf6   :  { %3070 = vmatpush.bf16.msrb.mxu0 %v4823_v22  ;;  %v4742_v22 = vld [vmem:[#allocation2 + $0xa30] sm:$0xf]  ;;  %v2800_v30 = vadd.f32 %v2799_v24, %v2786_v11  ;;  %v3647_v33 = vor.u32 %v5093_v19, %v3644_v20  ;;  %v5273_v19 = vld [vmem:[#allocation2 + $0x73c] sm:$0xf]  ;;  %v4047_v11 = vor.u32 %v5193_v10, %v4044_v12  ;;  %v5188_v24 = vld [vmem:[#allocation2 + $0x494] sm:$0xf] }
  0xf7   :  { %3084 = vmatpush.bf16.msrb.mxu1 %v4983_v28  ;;  %v5410_v28 = vld [vmem:[#allocation2 + $0xb80] sm:$0xf0]  ;;  %v4743_v41 = vor.u32 %v5370_v23, %v4742_v22  ;;  %v4364_v20 = vld [vmem:[#allocation2 + $0x74c] sm:$0xf0]  ;;  %v3864_v22 = vld [vmem:[#allocation2 + $0x364] sm:$0xf0]  ;;  %v4207_v23 = vor.u32 %v5233_v15, %v4204_v16 }
  0xf8   :  { %3098 = vmatpush.bf16.msrb.mxu2 %v3547_v32  ;;  %v2813_v32 = vpop.f32.mrf.mxu1  ;;  %v4903_v47 = vor.u32 %v5410_v28, %v4902_v26  ;;  %v4367_v26 = vor.u32 %v5273_v19, %v4364_v20  ;;  %v5228_v28 = vld [vmem:[#allocation2 + $0x5d4] sm:$0xf]  ;;  %v5213_v12 = vld [vmem:[#allocation2 + $0x55c] sm:$0xf]  ;;  %v4284_v20 = vld [vmem:[#allocation2 + $0x6ac] sm:$0xf0] }
  0xf9   :  { %3112 = vmatpush.bf16.msrb.mxu3 %v3707_v38  ;;  %v3624_v38 = vld [vmem:[#allocation2 + $0x184] sm:$0xf0]  ;;  %v2814_v35 = vadd.f32 %v2813_v32, %v2800_v30  ;;  %v5268_v32 = vld [vmem:[#allocation2 + $0x714] sm:$0xf]  ;;  %v5253_v19 = vld [vmem:[#allocation2 + $0x69c] sm:$0xf] }
  0xfa   :  { %3071 = vmatpush.bf16.msrb.mxu0 %v4803_v45  ;;  %v5365_v45 = vld [vmem:[#allocation2 + $0xa18] sm:$0xf0]  ;;  %v3627_v54 = vor.u32 %v5088_v37, %v3624_v38  ;;  %v5143_v37 = vld [vmem:[#allocation2 + $0x32c] sm:$0xf]  ;;  %v3844_v38 = vld [vmem:[#allocation2 + $0x33c] sm:$0xf0] }
  0xfb   :  { %3085 = vmatpush.bf16.msrb.mxu1 %v4963_v50  ;;  %v5405_v50 = vld [vmem:[#allocation2 + $0xb58] sm:$0xf0]  ;;  %3381 = vst [vmem:[%s5722_s3 + $0x28] sm:$0xff] %v2814_v35  ;;  %v4723_v57 = vor.u32 %v5365_v45, %v4722_v42  ;;  %v5183_v42 = vld [vmem:[#allocation2 + $0x46c] sm:$0xf]  ;;  %v2839_v18 = vpop.f32.mrf.mxu3  ;;  %v3847_v39 = vor.u32 %v5143_v37, %v3844_v38 }
  0xfc   :  { %3099 = vmatpush.bf16.msrb.mxu2 %v3527_v52  ;;  %v3904_v52 = vld [vmem:[#allocation2 + $0x3b4] sm:$0xf0]  ;;  %v4004_v45 = vld [vmem:[#allocation2 + $0x47c] sm:$0xf0] }
  0xfd   :  { %3113 = vmatpush.bf16.msrb.mxu3 %v3687_v58  ;;  %v4224_v58 = vld [vmem:[#allocation2 + $0x634] sm:$0xf0]  ;;  %v3907_v63 = vor.u32 %v5158_v51, %v3904_v52  ;;  %v4324_v51 = vld [vmem:[#allocation2 + $0x6fc] sm:$0xf0]  ;;  %v4007_v52 = vor.u32 %v5183_v42, %v4004_v45  ;;  %v5123_v42 = vld [vmem:[#allocation2 + $0x28c] sm:$0xf] }
  0xfe   :  { %3072 = vmatpush.bf16.msrb.mxu0 %v4783_v62  ;;  %v4883_v62 = vor.u32 %v5405_v50, %v4882_v46  ;;  %v4227_v9 = vor.u32 %v5238_v56, %v4224_v58  ;;  %v2825_v46 = vpop.f32.mrf.mxu2  ;;  %v4164_v50 = vld [vmem:[#allocation2 + $0x5bc] sm:$0xf0]  ;;  %v5178_v56 = vld [vmem:[#allocation2 + $0x444] sm:$0xf] }
  0xff   :  { %3086 = vmatpush.bf16.msrb.mxu1 %v4943_v43  ;;  %v4067_v43 = vor.u32 %v5198_v53, %v4064_v55  ;;  %v5138_v53 = vld [vmem:[#allocation2 + $0x304] sm:$0xf]  ;;  %v3764_v45 = vld [vmem:[#allocation2 + $0x29c] sm:$0xf0] }
 0x100   :  { %3100 = vmatpush.bf16.msrb.mxu2 %v3507_v1  ;;  %v3607_v1 = vor.u32 %v5083_v59, %v3604_v61  ;;  %v5218_v59 = vld [vmem:[#allocation2 + $0x584] sm:$0xf]  ;;  %v4144_v61 = vld [vmem:[#allocation2 + $0x594] sm:$0xf0] }
 0x101   :  { %3114 = vmatpush.bf16.msrb.mxu3 %v3667_v13  ;;  %v4387_v13 = vor.u32 %v5278_v0, %v4384_v3  ;;  %v5258_v0 = vld [vmem:[#allocation2 + $0x6c4] sm:$0xf]  ;;  %v4304_v3 = vld [vmem:[#allocation2 + $0x6d4] sm:$0xf0] }
 0x102   :  { %3073 = vmatpush.bf16.msrb.mxu0 %v4763_v17  ;;  %v3887_v17 = vor.u32 %v5153_v5, %v3884_v7  ;;  %v3804_v5 = vld [vmem:[#allocation2 + $0x2ec] sm:$0xf0]  ;;  %v4147_v7 = vor.u32 %v5218_v59, %v4144_v61  ;;  %v4307_v10 = vor.u32 %v5258_v0, %v4304_v3  ;;  %v5243_v59 = vld [vmem:[#allocation2 + $0x64c] sm:$0xf]  ;;  %v4244_v61 = vld [vmem:[#allocation2 + $0x65c] sm:$0xf0] }
 0x103   :  { %3087 = vmatpush.bf16.msrb.mxu1 %v4923_v21  ;;  %v5148_v21 = vld [vmem:[#allocation2 + $0x354] sm:$0xf]  ;;  %v5438_v3 = vld [vmem:[#allocation2 + $0xc64] sm:$0xf] }
 0x104   :  { %3101 = vmatpush.bf16.msrb.mxu2 %v3487_v25  ;;  %v4024_v25 = vld [vmem:[#allocation2 + $0x4a4] sm:$0xf0]  ;;  %v3867_v30 = vor.u32 %v5148_v21, %v3864_v22  ;;  %v5660_v21 = vpop.f32.mrf.mxu3  ;;  %v5128_v22 = vld [vmem:[#allocation2 + $0x2b4] sm:$0xf] }
 0x105   :  { %3115 = vmatpush.bf16.msrb.mxu3 %v3647_v33  ;;  %v4344_v33 = vld [vmem:[#allocation2 + $0x724] sm:$0xf0]  ;;  %v4027_v34 = vor.u32 %v5188_v24, %v4024_v25  ;;  %v5168_v25 = vld [vmem:[#allocation2 + $0x3f4] sm:$0xf] }
 0x106   :  { %3074 = vmatpush.bf16.msrb.mxu0 %v4743_v41  ;;  %v4187_v41 = vor.u32 %v5228_v28, %v4184_v29  ;;  %v4347_v35 = vor.u32 %v5268_v32, %v4344_v33  ;;  %v4287_v28 = vor.u32 %v5253_v19, %v4284_v20  ;;  %v4104_v32 = vld [vmem:[#allocation2 + $0x544] sm:$0xf0]  ;;  %v5248_v33 = vld [vmem:[#allocation2 + $0x674] sm:$0xf]  ;;  %v4684_v19 = vld [vmem:[#allocation2 + $0x9cc] sm:$0xf0] }
 0x107   :  { %3088 = vmatpush.bf16.msrb.mxu1 %v4903_v47  ;;  %v5223_v47 = vld [vmem:[#allocation2 + $0x5ac] sm:$0xf] }
 0x108   :  { %3102 = vmatpush.bf16.msrb.mxu2 %v3467_v49  ;;  %v5263_v49 = vld [vmem:[#allocation2 + $0x6ec] sm:$0xf]  ;;  %v4167_v55 = vor.u32 %v5223_v47, %v4164_v50  ;;  %v3924_v47 = vld [vmem:[#allocation2 + $0x3dc] sm:$0xf0] }
 0x109   :  { %3116 = vmatpush.bf16.msrb.mxu3 %v3627_v54  ;;  %v3824_v54 = vld [vmem:[#allocation2 + $0x314] sm:$0xf0]  ;;  %v4327_v58 = vor.u32 %v5263_v49, %v4324_v51  ;;  %v5203_v50 = vld [vmem:[#allocation2 + $0x50c] sm:$0xf]  ;;  %v4084_v49 = vld [vmem:[#allocation2 + $0x51c] sm:$0xf0] }
 0x10a   :  { %3075 = vmatpush.bf16.msrb.mxu0 %v4723_v57  ;;  %v3984_v57 = vld [vmem:[#allocation2 + $0x454] sm:$0xf0]  ;;  %v2853_v29 = vpop.f32.mrf.mxu0  ;;  %v5318_v51 = vld [vmem:[#allocation2 + $0x8a4] sm:$0xf] }
 0x10b   :  { %3089 = vmatpush.bf16.msrb.mxu1 %v4883_v62  ;;  %v537_v62 = vperm.slane %v5630_v6, 1  ;;  %v2867_v38 = vpop.f32.mrf.mxu1 }
 0x10c   :  { %3103 = vmatpush.bf16.msrb.mxu2 %v3447_v4  ;;  %v3987_v4 = vor.u32 %v5178_v56, %v3984_v57  ;;  %v3767_v57 = vor.u32 %v5123_v42, %v3764_v45  ;;  %v4824_v42 = vld [vmem:[#allocation2 + $0xae4] sm:$0xf0] }
 0x10d   :  { %3117 = vmatpush.bf16.msrb.mxu3 %v3607_v1  ;;  %3076 = vmatmul.bf16.vlgmr.msrb.gmra.mxu0 %v5613_v27  ;;  %v3964_v1 = vld [vmem:[#allocation2 + $0x42c] sm:$0xf0]  ;;  %v2826_v15 = vadd.f32 %v2825_v46, %v537_v62 }
 0x10e   :  { %3124 = vmatpush.bf16.msra.mxu0 %v3907_v63  ;;  %3090 = vmatmul.bf16.vlgmr.msrb.gmra.mxu1 %v5615_v31  ;;  %v3827_v63 = vor.u32 %v5138_v53, %v3824_v54  ;;  %v5358_v54 = vld [vmem:[#allocation2 + $0x9e4] sm:$0xf] }
 0x10f   :  { %3138 = vmatpush.bf16.msra.mxu1 %v4067_v43  ;;  %3104 = vmatmul.bf16.vlgmr.msrb.gmra.mxu2 %v5538_v60  ;;  %v5133_v43 = vld [vmem:[#allocation2 + $0x2dc] sm:$0xf] }
 0x110   :  { %3152 = vmatpush.bf16.msra.mxu2 %v4227_v9  ;;  %3118 = vmatmul.bf16.vlgmr.msrb.gmra.mxu3 %v5553_v8  ;;  %v5173_v9 = vld [vmem:[#allocation2 + $0x41c] sm:$0xf]  ;;  %v3807_v16 = vor.u32 %v5133_v43, %v3804_v5  ;;  %v4087_v43 = vor.u32 %v5203_v50, %v4084_v49  ;;  %v4484_v50 = vld [vmem:[#allocation2 + $0x83c] sm:$0xf0] }
 0x111   :  { %3166 = vmatpush.bf16.msra.mxu3 %v4387_v13  ;;  %v4124_v13 = vld [vmem:[#allocation2 + $0x56c] sm:$0xf0] }
 0x112   :  { %3125 = vmatpush.bf16.msra.mxu0 %v3887_v17  ;;  %v2827_v17 = vpop.f32.mrf.mxu2  ;;  %v4127_v24 = vor.u32 %v5213_v12, %v4124_v13  ;;  %v4247_v13 = vor.u32 %v5243_v59, %v4244_v61  ;;  %v5423_v59 = vld [vmem:[#allocation2 + $0xbec] sm:$0xf]  ;;  %v4964_v61 = vld [vmem:[#allocation2 + $0xbfc] sm:$0xf0] }
 0x113   :  { %3139 = vmatpush.bf16.msra.mxu1 %v4047_v11  ;;  %v3967_v11 = vor.u32 %v5173_v9, %v3964_v1  ;;  %v5313_v9 = vld [vmem:[#allocation2 + $0x87c] sm:$0xf]  ;;  %v4524_v1 = vld [vmem:[#allocation2 + $0x88c] sm:$0xf0] }
 0x114   :  { %3153 = vmatpush.bf16.msra.mxu2 %v4207_v23  ;;  %v3784_v23 = vld [vmem:[#allocation2 + $0x2c4] sm:$0xf0] }
 0x115   :  { %3167 = vmatpush.bf16.msra.mxu3 %v4367_v26  ;;  %v3944_v26 = vld [vmem:[#allocation2 + $0x404] sm:$0xf0]  ;;  %v3787_v37 = vor.u32 %v5128_v22, %v3784_v23  ;;  %v5393_v22 = vld [vmem:[#allocation2 + $0xafc] sm:$0xf]  ;;  %v4844_v23 = vld [vmem:[#allocation2 + $0xb0c] sm:$0xf0] }
 0x116   :  { %3126 = vmatpush.bf16.msra.mxu0 %v3867_v30  ;;  %v5208_v30 = vld [vmem:[#allocation2 + $0x534] sm:$0xf]  ;;  %v3947_v46 = vor.u32 %v5168_v25, %v3944_v26  ;;  %v4527_v25 = vor.u32 %v5313_v9, %v4524_v1  ;;  %v5433_v26 = vld [vmem:[#allocation2 + $0xc3c] sm:$0xf]  ;;  %v4624_v9 = vld [vmem:[#allocation2 + $0x954] sm:$0xf0] }
 0x117   :  { %3140 = vmatpush.bf16.msra.mxu1 %v4027_v34  ;;  %v2840_v34 = vadd.f32 %v2839_v18, %v2826_v15  ;;  %v4704_v18 = vld [vmem:[#allocation2 + $0x9f4] sm:$0xf0]  ;;  %v2895_v15 = vpop.f32.mrf.mxu3 }
 0x118   :  { %3154 = vmatpush.bf16.msra.mxu2 %v4187_v41  ;;  %v4264_v41 = vld [vmem:[#allocation2 + $0x684] sm:$0xf0]  ;;  %v4707_v5 = vor.u32 %v5358_v54, %v4704_v18 }
 0x119   :  { %3168 = vmatpush.bf16.msra.mxu3 %v4347_v35  ;;  %v5163_v35 = vld [vmem:[#allocation2 + $0x3cc] sm:$0xf]  ;;  %v4267_v53 = vor.u32 %v5248_v33, %v4264_v41  ;;  %v2854_v56 = vadd.f32 %v2853_v29, %v2840_v34  ;;  %v4504_v29 = vld [vmem:[#allocation2 + $0x864] sm:$0xf0]  ;;  %v5348_v33 = vld [vmem:[#allocation2 + $0x994] sm:$0xf] }
 0x11a   :  { %3127 = vmatpush.bf16.msra.mxu0 %v3847_v39  ;;  %v4107_v39 = vor.u32 %v5208_v30, %v4104_v32  ;;  %v4847_v32 = vor.u32 %v5393_v22, %v4844_v23  ;;  %v4664_v34 = vld [vmem:[#allocation2 + $0x9a4] sm:$0xf0]  ;;  %v5388_v41 = vld [vmem:[#allocation2 + $0xad4] sm:$0xf]  ;;  %v5293_v22 = vld [vmem:[#allocation2 + $0x7dc] sm:$0xf] }
 0x11b   :  { %3141 = vmatpush.bf16.msra.mxu1 %v4007_v52  ;;  %v4544_v52 = vld [vmem:[#allocation2 + $0x8b4] sm:$0xf0]  ;;  %v2868_v20 = vadd.f32 %v2867_v38, %v2854_v56  ;;  %v4827_v49 = vor.u32 %v5388_v41, %v4824_v42  ;;  %v4804_v56 = vld [vmem:[#allocation2 + $0xabc] sm:$0xf0]  ;;  %v4444_v23 = vld [vmem:[#allocation2 + $0x7ec] sm:$0xf0] }
 0x11c   :  { %3155 = vmatpush.bf16.msra.mxu2 %v4167_v55  ;;  %v5398_v55 = vld [vmem:[#allocation2 + $0xb24] sm:$0xf]  ;;  %v4547_v0 = vor.u32 %v5318_v51, %v4544_v52  ;;  %v5343_v51 = vld [vmem:[#allocation2 + $0x96c] sm:$0xf]  ;;  %v4644_v52 = vld [vmem:[#allocation2 + $0x97c] sm:$0xf0] }
 0x11d   :  { %3169 = vmatpush.bf16.msra.mxu3 %v4327_v58  ;;  %v4864_v58 = vld [vmem:[#allocation2 + $0xb34] sm:$0xf0]  ;;  %v4424_v41 = vld [vmem:[#allocation2 + $0x7c4] sm:$0xf0] }
 0x11e   :  { %3128 = vmatpush.bf16.msra.mxu0 %v3827_v63  ;;  %v3927_v63 = vor.u32 %v5163_v35, %v3924_v47  ;;  %v4867_v12 = vor.u32 %v5398_v55, %v4864_v58  ;;  %v4984_v35 = vld [vmem:[#allocation2 + $0xc24] sm:$0xf0]  ;;  %v5303_v47 = vld [vmem:[#allocation2 + $0x82c] sm:$0xf] }
 0x11f   :  { %3142 = vmatpush.bf16.msra.mxu1 %v3987_v4  ;;  %v5024_v4 = vld [vmem:[#allocation2 + $0xc74] sm:$0xf0]  ;;  %v5383_v55 = vld [vmem:[#allocation2 + $0xaac] sm:$0xf]  ;;  %v4487_v58 = vor.u32 %v5303_v47, %v4484_v50  ;;  %v5328_v47 = vld [vmem:[#allocation2 + $0x8f4] sm:$0xf] }
 0x120   :  { %3156 = vmatpush.bf16.msra.mxu2 %v4147_v7  ;;  %v2881_v7 = vpop.f32.mrf.mxu2  ;;  %v4584_v50 = vld [vmem:[#allocation2 + $0x904] sm:$0xf0] }
 0x121   :  { %3170 = vmatpush.bf16.msra.mxu3 %v4307_v10  ;;  %v2828_v10 = vadd.f32 %v2827_v17, %v537_v62  ;;  %v2869_v62 = vpop.f32.mrf.mxu1  ;;  %v5308_v17 = vld [vmem:[#allocation2 + $0x854] sm:$0xf] }
 0x122   :  { %3129 = vmatpush.bf16.msra.mxu0 %v3807_v16  ;;  %v5353_v16 = vld [vmem:[#allocation2 + $0x9bc] sm:$0xf]  ;;  %v4507_v45 = vor.u32 %v5308_v17, %v4504_v29  ;;  %v4764_v29 = vld [vmem:[#allocation2 + $0xa6c] sm:$0xf0] }
 0x123   :  { %3143 = vmatpush.bf16.msra.mxu1 %v3967_v11  ;;  %v5027_v11 = vor.u32 %v5438_v3, %v5024_v4  ;;  %v4687_v6 = vor.u32 %v5353_v16, %v4684_v19  ;;  %v2842_v30 = vadd.f32 %v5660_v21, %v2828_v10  ;;  %v4667_v21 = vor.u32 %v5348_v33, %v4664_v34  ;;  %v4464_v3 = vld [vmem:[#allocation2 + $0x814] sm:$0xf0]  ;;  %v5418_v19 = vld [vmem:[#allocation2 + $0xbc4] sm:$0xf]  ;;  %v5373_v17 = vld [vmem:[#allocation2 + $0xa5c] sm:$0xf] }
 0x124   :  { %3157 = vmatpush.bf16.msra.mxu2 %v4127_v24  ;;  %v2855_v24 = vpop.f32.mrf.mxu0  ;;  %v4924_v33 = vld [vmem:[#allocation2 + $0xbac] sm:$0xf0] }
 0x125   :  { %3171 = vmatpush.bf16.msra.mxu3 %v4287_v28  ;;  %v5004_v28 = vld [vmem:[#allocation2 + $0xc4c] sm:$0xf0] }
 0x126   :  { %3130 = vmatpush.bf16.msra.mxu0 %v3787_v37  ;;  %v2882_v37 = vadd.f32 %v2881_v7, %v2868_v20  ;;  %v5007_v38 = vor.u32 %v5433_v26, %v5004_v28  ;;  %v5338_v7 = vld [vmem:[#allocation2 + $0x944] sm:$0xf]  ;;  %v4944_v20 = vld [vmem:[#allocation2 + $0xbd4] sm:$0xf0]  ;;  %v5333_v28 = vld [vmem:[#allocation2 + $0x91c] sm:$0xf] }
 0x127   :  { %3144 = vmatpush.bf16.msra.mxu1 %v3947_v46  ;;  %v5428_v46 = vld [vmem:[#allocation2 + $0xc14] sm:$0xf] }
 0x128   :  { %3158 = vmatpush.bf16.msra.mxu2 %v4107_v39  ;;  %v2856_v39 = vadd.f32 %v2855_v24, %v2842_v30  ;;  %v2883_v54 = vpop.f32.mrf.mxu2  ;;  %v4987_v18 = vor.u32 %v5428_v46, %v4984_v35  ;;  %v4447_v30 = vor.u32 %v5293_v22, %v4444_v23  ;;  %v4070_v23 = vld [vmem:[#allocation2 + $0x4e8] sm:$0xf] }
 0x129   :  { %3172 = vmatpush.bf16.msra.mxu3 %v4267_v53  ;;  %v2896_v53 = vadd.f32 %v2895_v15, %v2882_v37  ;;  %v4784_v15 = vld [vmem:[#allocation2 + $0xa94] sm:$0xf0] }
 0x12a   :  { %3131 = vmatpush.bf16.msra.mxu0 %v3767_v57  ;;  %v2897_v57 = vpop.f32.mrf.mxu3  ;;  %v2870_v4 = vadd.f32 %v2869_v62, %v2856_v39  ;;  %v4947_v62 = vor.u32 %v5418_v19, %v4944_v20  ;;  %v5368_v39 = vld [vmem:[#allocation2 + $0xa34] sm:$0xf]  ;;  %v4884_v19 = vld [vmem:[#allocation2 + $0xb5c] sm:$0xf0] }
 0x12b   :  { %3145 = vmatpush.bf16.msra.mxu1 %v3927_v63  ;;  %v4647_v63 = vor.u32 %v5343_v51, %v4644_v52  ;;  %v2923_v10 = vpop.f32.mrf.mxu1  ;;  %v4744_v51 = vld [vmem:[#allocation2 + $0xa44] sm:$0xf0]  ;;  %v5408_v52 = vld [vmem:[#allocation2 + $0xb74] sm:$0xf] }
 0x12c   :  { %3159 = vmatpush.bf16.msra.mxu2 %v4087_v43  ;;  %v2909_v43 = vpop.f32.mrf.mxu0  ;;  %v2884_v24 = vadd.f32 %v2883_v54, %v2870_v4  ;;  %v4747_v4 = vor.u32 %v5368_v39, %v4744_v51  ;;  %v3710_v39 = vld [vmem:[#allocation2 + $0x218] sm:$0xf]  ;;  %v5111_v51 = vld [vmem:[#allocation2 + $0x228] sm:$0xf0] }
 0x12d   :  { %3173 = vmatpush.bf16.msra.mxu3 %v4247_v13  ;;  %3132 = vmatmul.bf16.vlgmr.msra.gmra.mxu0 %v5543_v2  ;;  %v2910_v1 = vadd.f32 %v2909_v43, %v2896_v53  ;;  %v5378_v13 = vld [vmem:[#allocation2 + $0xa84] sm:$0xf]  ;;  %v4904_v53 = vld [vmem:[#allocation2 + $0xb84] sm:$0xf0] }
 0x12e   :  { %3180 = vmatpush.bf16.msrb.mxu0 %v4547_v0  ;;  %3146 = vmatmul.bf16.vlgmr.msra.gmra.mxu1 %v5561_v14  ;;  %v5298_v0 = vld [vmem:[#allocation2 + $0x804] sm:$0xf]  ;;  %v4787_v26 = vor.u32 %v5378_v13, %v4784_v15  ;;  %v2898_v42 = vadd.f32 %v2897_v57, %v2884_v24  ;;  %v5323_v57 = vld [vmem:[#allocation2 + $0x8cc] sm:$0xf]  ;;  %v3590_v43 = vld [vmem:[#allocation2 + $0x128] sm:$0xf] }
 0x12f   :  { %3194 = vmatpush.bf16.msrb.mxu1 %v4707_v5  ;;  %3160 = vmatmul.bf16.vlgmr.msra.gmra.mxu2 %v5586_v36  ;;  %v4807_v5 = vor.u32 %v5383_v55, %v4804_v56  ;;  %v4467_v16 = vor.u32 %v5298_v0, %v4464_v3  ;;  %v5283_v56 = vld [vmem:[#allocation2 + $0x78c] sm:$0xf]  ;;  %v4724_v3 = vld [vmem:[#allocation2 + $0xa1c] sm:$0xf0]  ;;  %v5161_v15 = vld [vmem:[#allocation2 + $0x3b8] sm:$0xf0] }
 0x130   :  { %3208 = vmatpush.bf16.msrb.mxu2 %v4867_v12  ;;  %3174 = vmatmul.bf16.vlgmr.msra.gmra.mxu3 %v5593_v44  ;;  %v4967_v12 = vor.u32 %v5423_v59, %v4964_v61  ;;  %v4587_v61 = vor.u32 %v5328_v47, %v4584_v50  ;;  %v5363_v0 = vld [vmem:[#allocation2 + $0xa0c] sm:$0xf]  ;;  %v5201_v24 = vld [vmem:[#allocation2 + $0x4f8] sm:$0xf0]  ;;  %v3550_v47 = vld [vmem:[#allocation2 + $0xd8] sm:$0xf] }
 0x131   :  { %3222 = vmatpush.bf16.msrb.mxu3 %v5027_v11  ;;  %v4627_v11 = vor.u32 %v5338_v7, %v4624_v9  ;;  %v4907_v7 = vor.u32 %v5408_v52, %v4904_v53  ;;  %v3750_v9 = vld [vmem:[#allocation2 + $0x268] sm:$0xf]  ;;  %v5071_v50 = vld [vmem:[#allocation2 + $0xe8] sm:$0xf0]  ;;  %v3870_v52 = vld [vmem:[#allocation2 + $0x358] sm:$0xf] }
 0x132   :  { %3181 = vmatpush.bf16.msrb.mxu0 %v4527_v25  ;;  %v2924_v25 = vadd.f32 %v2923_v10, %v2910_v1  ;;  %v2937_v34 = vpop.f32.mrf.mxu2  ;;  %v5121_v1 = vld [vmem:[#allocation2 + $0x278] sm:$0xf0]  ;;  %v3910_v10 = vld [vmem:[#allocation2 + $0x3a8] sm:$0xf]  ;;  %v5151_v53 = vld [vmem:[#allocation2 + $0x368] sm:$0xf0] }
 0x133   :  { %3195 = vmatpush.bf16.msrb.mxu1 %v4687_v6  ;;  %v4604_v6 = vld [vmem:[#allocation2 + $0x92c] sm:$0xf0]  ;;  %v2951_v35 = vpop.f32.mrf.mxu3  ;;  %v2925_v59 = vpop.f32.mrf.mxu1 }
 0x134   :  { %3209 = vmatpush.bf16.msrb.mxu2 %v4847_v32  ;;  %v5413_v32 = vld [vmem:[#allocation2 + $0xb9c] sm:$0xf]  ;;  %v4607_v37 = vor.u32 %v5333_v28, %v4604_v6  ;;  %v2911_v46 = vpop.f32.mrf.mxu0  ;;  %v4727_v28 = vor.u32 %v5363_v0, %v4724_v3  ;;  %v3751_v6 = vor.u32 %v5121_v1, %v3750_v9  ;;  %v5106_v0 = vld [vmem:[#allocation2 + $0x200] sm:$0xf0]  ;;  %v3850_v3 = vld [vmem:[#allocation2 + $0x330] sm:$0xf] }
 0x135   :  { %3223 = vmatpush.bf16.msrb.mxu3 %v5007_v38  ;;  %v5288_v38 = vld [vmem:[#allocation2 + $0x7b4] sm:$0xf]  ;;  %v2912_v54 = vadd.f32 %v2911_v46, %v2898_v42  ;;  %v4050_v42 = vld [vmem:[#allocation2 + $0x4c0] sm:$0xf] }
 0x136   :  { %3182 = vmatpush.bf16.msrb.mxu0 %v4507_v45  ;;  %v2938_v45 = vadd.f32 %v2937_v34, %v2924_v25  ;;  %v4427_v55 = vor.u32 %v5288_v38, %v4424_v41  ;;  %v4071_v34 = vor.u32 %v5201_v24, %v4070_v23  ;;  %v3890_v38 = vld [vmem:[#allocation2 + $0x380] sm:$0xf]  ;;  %v5156_v41 = vld [vmem:[#allocation2 + $0x390] sm:$0xf0] }
 0x137   :  { %3196 = vmatpush.bf16.msrb.mxu1 %v4667_v21  ;;  %v4767_v21 = vor.u32 %v5373_v17, %v4764_v29  ;;  %v3570_v29 = vld [vmem:[#allocation2 + $0x100] sm:$0xf] }
 0x138   :  { %3210 = vmatpush.bf16.msrb.mxu2 %v4827_v49  ;;  %v4927_v49 = vor.u32 %v5413_v32, %v4924_v33  ;;  %v3730_v32 = vld [vmem:[#allocation2 + $0x240] sm:$0xf] }
 0x139   :  { %3224 = vmatpush.bf16.msrb.mxu3 %v4987_v18  ;;  %v2952_v18 = vadd.f32 %v2951_v35, %v2938_v45  ;;  %v5196_v45 = vld [vmem:[#allocation2 + $0x4d0] sm:$0xf0] }
 0x13a   :  { %3183 = vmatpush.bf16.msrb.mxu0 %v4487_v58  ;;  %v4404_v58 = vld [vmem:[#allocation2 + $0x79c] sm:$0xf0]  ;;  %v2939_v20 = vpop.f32.mrf.mxu2 }
 0x13b   :  { %3197 = vmatpush.bf16.msrb.mxu1 %v4647_v63  ;;  %v4564_v63 = vld [vmem:[#allocation2 + $0x8dc] sm:$0xf0]  ;;  %3377 = vst [vmem:[%s5722_s3 + $0x8] sm:$0xff] %v2952_v18  ;;  %v4407_v13 = vor.u32 %v5283_v56, %v4404_v58  ;;  %v5191_v18 = vld [vmem:[#allocation2 + $0x4a8] sm:$0xf0]  ;;  %v3711_v56 = vor.u32 %v5111_v51, %v3710_v39  ;;  %v3871_v58 = vor.u32 %v5151_v53, %v3870_v52 }
 0x13c   :  { %3211 = vmatpush.bf16.msrb.mxu2 %v4807_v5  ;;  %v5081_v5 = vld [vmem:[#allocation2 + $0x138] sm:$0xf0]  ;;  %v5171_v39 = vld [vmem:[#allocation2 + $0x408] sm:$0xf0]  ;;  %v3450_v51 = vld [vmem:[#allocation2 + $0x10] sm:$0xf] }
 0x13d   :  { %3225 = vmatpush.bf16.msrb.mxu3 %v4967_v12  ;;  %v2926_v12 = vadd.f32 %v2925_v59, %v2912_v54  ;;  %v3591_v22 = vor.u32 %v5081_v5, %v3590_v43  ;;  %v4030_v54 = vld [vmem:[#allocation2 + $0x498] sm:$0xf]  ;;  %v5066_v59 = vld [vmem:[#allocation2 + $0xc0] sm:$0xf0]  ;;  %v4010_v43 = vld [vmem:[#allocation2 + $0x470] sm:$0xf] }
 0x13e   :  { %3184 = vmatpush.bf16.msrb.mxu0 %v4467_v16  ;;  %v5403_v16 = vld [vmem:[#allocation2 + $0xb4c] sm:$0xf]  ;;  %v5186_v5 = vld [vmem:[#allocation2 + $0x480] sm:$0xf0] }
 0x13f   :  { %3198 = vmatpush.bf16.msrb.mxu1 %v4627_v11  ;;  %v4567_v11 = vor.u32 %v5323_v57, %v4564_v63  ;;  %v2940_v25 = vadd.f32 %v2939_v20, %v2926_v12  ;;  %v4887_v17 = vor.u32 %v5403_v16, %v4884_v19  ;;  %v3530_v57 = vld [vmem:[#allocation2 + $0xb0] sm:$0xf]  ;;  %v4031_v63 = vor.u32 %v5191_v18, %v4030_v54  ;;  %v5061_v12 = vld [vmem:[#allocation2 + $0x98] sm:$0xf0]  ;;  %v3830_v19 = vld [vmem:[#allocation2 + $0x308] sm:$0xf] }
 0x140   :  { %3212 = vmatpush.bf16.msrb.mxu2 %v4787_v26  ;;  %v2953_v26 = vpop.f32.mrf.mxu3  ;;  %v5101_v16 = vld [vmem:[#allocation2 + $0x1d8] sm:$0xf0]  ;;  %v5046_v52 = vld [vmem:[#allocation2 + $0x20] sm:$0xf0]  ;;  %v3610_v18 = vld [vmem:[#allocation2 + $0x150] sm:$0xf] }
 0x141   :  { %3226 = vmatpush.bf16.msrb.mxu3 %v4947_v62  ;;  %v3911_v62 = vor.u32 %v5161_v15, %v3910_v10  ;;  %v2954_v33 = vadd.f32 %v2953_v26, %v2940_v25  ;;  %v3510_v10 = vld [vmem:[#allocation2 + $0x88] sm:$0xf]  ;;  %v4011_v15 = vor.u32 %v5186_v5, %v4010_v43  ;;  %v5141_v20 = vld [vmem:[#allocation2 + $0x318] sm:$0xf0]  ;;  %v3490_v26 = vld [vmem:[#allocation2 + $0x60] sm:$0xf] }
 0x142   :  { %3185 = vmatpush.bf16.msrb.mxu0 %v4447_v30  ;;  %v5076_v30 = vld [vmem:[#allocation2 + $0x110] sm:$0xf0]  ;;  %v3511_v23 = vor.u32 %v5061_v12, %v3510_v10  ;;  %v3831_v25 = vor.u32 %v5141_v20, %v3830_v19  ;;  %v5321_v43 = vld [vmem:[#allocation2 + $0x8b8] sm:$0xf0]  ;;  %v3930_v5 = vld [vmem:[#allocation2 + $0x3d0] sm:$0xf] }
 0x143   :  { %3199 = vmatpush.bf16.msrb.mxu1 %v4607_v37  ;;  %v5116_v37 = vld [vmem:[#allocation2 + $0x250] sm:$0xf0]  ;;  %3382 = vst [vmem:[%s5722_s3 + $0x30] sm:$0xff] %v2954_v33  ;;  %v3571_v46 = vor.u32 %v5076_v30, %v3570_v29  ;;  %v3810_v29 = vld [vmem:[#allocation2 + $0x2e0] sm:$0xf] }
 0x144   :  { %3213 = vmatpush.bf16.msrb.mxu2 %v4767_v21  ;;  %v3731_v35 = vor.u32 %v5116_v37, %v3730_v32  ;;  %v3891_v21 = vor.u32 %v5156_v41, %v3890_v38  ;;  %v5136_v30 = vld [vmem:[#allocation2 + $0x2f0] sm:$0xf0]  ;;  %v3970_v32 = vld [vmem:[#allocation2 + $0x420] sm:$0xf]  ;;  %v3470_v41 = vld [vmem:[#allocation2 + $0x38] sm:$0xf] }
 0x145   :  { %3227 = vmatpush.bf16.msrb.mxu3 %v4927_v49  ;;  %v4051_v49 = vor.u32 %v5196_v45, %v4050_v42  ;;  %v5176_v33 = vld [vmem:[#allocation2 + $0x430] sm:$0xf0]  ;;  %v3811_v38 = vor.u32 %v5136_v30, %v3810_v29  ;;  %v5051_v42 = vld [vmem:[#allocation2 + $0x48] sm:$0xf0]  ;;  %v3630_v45 = vld [vmem:[#allocation2 + $0x178] sm:$0xf] }
 0x146   :  { %3186 = vmatpush.bf16.msrb.mxu0 %v4427_v55  ;;  %v3551_v55 = vor.u32 %v5071_v50, %v3550_v47  ;;  %v5131_v47 = vld [vmem:[#allocation2 + $0x2c8] sm:$0xf0]  ;;  %v3950_v50 = vld [vmem:[#allocation2 + $0x3f8] sm:$0xf]  ;;  %v4710_v10 = vld [vmem:[#allocation2 + $0x9e8] sm:$0xf] }
 0x147   :  { %3200 = vmatpush.bf16.msrb.mxu1 %v4587_v61  ;;  %v3690_v61 = vld [vmem:[#allocation2 + $0x1f0] sm:$0xf]  ;;  %v5361_v12 = vld [vmem:[#allocation2 + $0x9f8] sm:$0xf0]  ;;  %v4190_v29 = vld [vmem:[#allocation2 + $0x5d8] sm:$0xf] }
 0x148   :  { %3214 = vmatpush.bf16.msrb.mxu2 %v4747_v4  ;;  %v5146_v4 = vld [vmem:[#allocation2 + $0x340] sm:$0xf0]  ;;  %v3691_v9 = vor.u32 %v5106_v0, %v3690_v61  ;;  %v5241_v61 = vld [vmem:[#allocation2 + $0x638] sm:$0xf0] }
 0x149   :  { %3228 = vmatpush.bf16.msrb.mxu3 %v4907_v7  ;;  %v3531_v7 = vor.u32 %v5066_v59, %v3530_v57  ;;  %v3851_v1 = vor.u32 %v5146_v4, %v3850_v3  ;;  %v5126_v57 = vld [vmem:[#allocation2 + $0x2a0] sm:$0xf0]  ;;  %v4230_v59 = vld [vmem:[#allocation2 + $0x628] sm:$0xf]  ;;  %v5281_v0 = vld [vmem:[#allocation2 + $0x778] sm:$0xf0]  ;;  %v3451_v4 = vor.u32 %v5046_v52, %v3450_v51 }
 0x14a   :  { %3187 = vmatpush.bf16.msrb.mxu0 %v4407_v13  ;;  %v3670_v13 = vld [vmem:[#allocation2 + $0x1c8] sm:$0xf]  ;;  %v2965_v30 = vpop.f32.mrf.mxu0  ;;  %v4330_v51 = vld [vmem:[#allocation2 + $0x6f0] sm:$0xf]  ;;  %v5266_v52 = vld [vmem:[#allocation2 + $0x700] sm:$0xf0] }
 0x14b   :  { %3201 = vmatpush.bf16.msrb.mxu1 %v4567_v11  ;;  %v3990_v11 = vld [vmem:[#allocation2 + $0x448] sm:$0xf]  ;;  %v3671_v24 = vor.u32 %v5101_v16, %v3670_v13  ;;  %v4231_v13 = vor.u32 %v5241_v61, %v4230_v59  ;;  %v4210_v16 = vld [vmem:[#allocation2 + $0x600] sm:$0xf] }
 0x14c   :  { %3215 = vmatpush.bf16.msrb.mxu2 %v4727_v28  ;;  %v5056_v28 = vld [vmem:[#allocation2 + $0x70] sm:$0xf0]  ;;  %v4550_v3 = vld [vmem:[#allocation2 + $0x8a8] sm:$0xf] }
 0x14d   :  { %3229 = vmatpush.bf16.msrb.mxu3 %v4887_v17  ;;  %3188 = vmatmul.bf16.vlgmr.msrb.gmra.mxu0 %v5591_v40  ;;  %v5096_v17 = vld [vmem:[#allocation2 + $0x1b0] sm:$0xf0]  ;;  %v4551_v19 = vor.u32 %v5321_v43, %v4550_v3  ;;  %v4470_v43 = vld [vmem:[#allocation2 + $0x808] sm:$0xf] }
 0x14e   :  { %3236 = vmatpush.bf16.msra.mxu0 %v3591_v22  ;;  %3202 = vmatmul.bf16.vlgmr.msrb.gmra.mxu1 %v5595_v48  ;;  %v5181_v22 = vld [vmem:[#allocation2 + $0x458] sm:$0xf0] }
 0x14f   :  { %3250 = vmatpush.bf16.msra.mxu1 %v3751_v6  ;;  %3216 = vmatmul.bf16.vlgmr.msrb.gmra.mxu2 %v5613_v27  ;;  %v3650_v6 = vld [vmem:[#allocation2 + $0x1a0] sm:$0xf] }
 0x150   :  { %3264 = vmatpush.bf16.msra.mxu2 %v3911_v62  ;;  %3230 = vmatmul.bf16.vlgmr.msrb.gmra.mxu3 %v5615_v31  ;;  %v3991_v62 = vor.u32 %v5181_v22, %v3990_v11  ;;  %v3651_v37 = vor.u32 %v5096_v17, %v3650_v6  ;;  %v5236_v11 = vld [vmem:[#allocation2 + $0x610] sm:$0xf0]  ;;  %v4370_v22 = vld [vmem:[#allocation2 + $0x740] sm:$0xf] }
 0x151   :  { %3278 = vmatpush.bf16.msra.mxu3 %v4071_v34  ;;  %v3491_v34 = vor.u32 %v5056_v28, %v3490_v26  ;;  %v5316_v26 = vld [vmem:[#allocation2 + $0x890] sm:$0xf0]  ;;  %v4690_v28 = vld [vmem:[#allocation2 + $0x9c0] sm:$0xf] }
 0x152   :  { %3237 = vmatpush.bf16.msra.mxu0 %v3571_v46  ;;  %v3971_v46 = vor.u32 %v5176_v33, %v3970_v32  ;;  %v5356_v6 = vld [vmem:[#allocation2 + $0x9d0] sm:$0xf0]  ;;  %v5231_v33 = vld [vmem:[#allocation2 + $0x5e8] sm:$0xf0]  ;;  %v2993_v59 = vpop.f32.mrf.mxu2 }
 0x153   :  { %3251 = vmatpush.bf16.msra.mxu1 %v3731_v35  ;;  %v5091_v35 = vld [vmem:[#allocation2 + $0x188] sm:$0xf0] }
 0x154   :  { %3265 = vmatpush.bf16.msra.mxu2 %v3891_v21  ;;  %v3790_v21 = vld [vmem:[#allocation2 + $0x2b8] sm:$0xf]  ;;  %v3631_v53 = vor.u32 %v5091_v35, %v3630_v45  ;;  %v5311_v45 = vld [vmem:[#allocation2 + $0x868] sm:$0xf0] }
 0x155   :  { %3279 = vmatpush.bf16.msra.mxu3 %v4051_v49  ;;  %v3471_v49 = vor.u32 %v5051_v42, %v3470_v41  ;;  %v3791_v54 = vor.u32 %v5131_v47, %v3790_v21  ;;  %v4691_v41 = vor.u32 %v5356_v6, %v4690_v28  ;;  %v4510_v42 = vld [vmem:[#allocation2 + $0x858] sm:$0xf]  ;;  %v5351_v35 = vld [vmem:[#allocation2 + $0x9a8] sm:$0xf0]  ;;  %v4191_v21 = vor.u32 %v5231_v33, %v4190_v29  ;;  %v4610_v28 = vld [vmem:[#allocation2 + $0x920] sm:$0xf] }
 0x156   :  { %3238 = vmatpush.bf16.msra.mxu0 %v3551_v55  ;;  %v5086_v55 = vld [vmem:[#allocation2 + $0x160] sm:$0xf0]  ;;  %v5336_v6 = vld [vmem:[#allocation2 + $0x930] sm:$0xf0]  ;;  %v4110_v29 = vld [vmem:[#allocation2 + $0x538] sm:$0xf] }
 0x157   :  { %3252 = vmatpush.bf16.msra.mxu1 %v3711_v56  ;;  %v3770_v56 = vld [vmem:[#allocation2 + $0x290] sm:$0xf]  ;;  %v4270_v33 = vld [vmem:[#allocation2 + $0x678] sm:$0xf] }
 0x158   :  { %3266 = vmatpush.bf16.msra.mxu2 %v3871_v58  ;;  %v3951_v58 = vor.u32 %v5171_v39, %v3950_v50  ;;  %v4170_v50 = vld [vmem:[#allocation2 + $0x5b0] sm:$0xf]  ;;  %v4511_v39 = vor.u32 %v5311_v45, %v4510_v42  ;;  %v5291_v42 = vld [vmem:[#allocation2 + $0x7c8] sm:$0xf0] }
 0x159   :  { %3280 = vmatpush.bf16.msra.mxu3 %v4031_v63  ;;  %v4390_v63 = vld [vmem:[#allocation2 + $0x768] sm:$0xf] }
 0x15a   :  { %3239 = vmatpush.bf16.msra.mxu0 %v3531_v7  ;;  %v5166_v7 = vld [vmem:[#allocation2 + $0x3e0] sm:$0xf0]  ;;  %v2995_v45 = vpop.f32.mrf.mxu2 }
 0x15b   :  { %3253 = vmatpush.bf16.msra.mxu1 %v3691_v9  ;;  %v3611_v9 = vor.u32 %v5086_v55, %v3610_v18  ;;  %v3931_v20 = vor.u32 %v5166_v7, %v3930_v5  ;;  %v4650_v18 = vld [vmem:[#allocation2 + $0x970] sm:$0xf]  ;;  %v5346_v55 = vld [vmem:[#allocation2 + $0x980] sm:$0xf0]  ;;  %v5301_v5 = vld [vmem:[#allocation2 + $0x818] sm:$0xf0]  ;;  %v2967_v7 = vpop.f32.mrf.mxu0 }
 0x15c   :  { %3267 = vmatpush.bf16.msra.mxu2 %v3851_v1  ;;  %v3771_v1 = vor.u32 %v5126_v57, %v3770_v56  ;;  %v4150_v57 = vld [vmem:[#allocation2 + $0x588] sm:$0xf] }
 0x15d   :  { %3281 = vmatpush.bf16.msra.mxu3 %v4011_v15  ;;  %v4391_v15 = vor.u32 %v5281_v0, %v4390_v63  ;;  %v5221_v63 = vld [vmem:[#allocation2 + $0x598] sm:$0xf0] }
 0x15e   :  { %3240 = vmatpush.bf16.msra.mxu0 %v3511_v23  ;;  %v5276_v23 = vld [vmem:[#allocation2 + $0x750] sm:$0xf0]  ;;  %v5261_v0 = vld [vmem:[#allocation2 + $0x6d8] sm:$0xf0] }
 0x15f   :  { %3254 = vmatpush.bf16.msra.mxu1 %v3671_v24  ;;  %v4711_v24 = vor.u32 %v5361_v12, %v4710_v10  ;;  %v4371_v17 = vor.u32 %v5276_v23, %v4370_v22  ;;  %v4151_v12 = vor.u32 %v5221_v63, %v4150_v57  ;;  %v5256_v22 = vld [vmem:[#allocation2 + $0x6b0] sm:$0xf0]  ;;  %v4870_v57 = vld [vmem:[#allocation2 + $0xb28] sm:$0xf] }
 0x160   :  { %3268 = vmatpush.bf16.msra.mxu2 %v3831_v25  ;;  %v4530_v25 = vld [vmem:[#allocation2 + $0x880] sm:$0xf] }
 0x161   :  { %3282 = vmatpush.bf16.msra.mxu3 %v3991_v62  ;;  %v4211_v62 = vor.u32 %v5236_v11, %v4210_v16  ;;  %v4531_v32 = vor.u32 %v5316_v26, %v4530_v25  ;;  %v3007_v16 = vpop.f32.mrf.mxu3  ;;  %v4290_v11 = vld [vmem:[#allocation2 + $0x6a0] sm:$0xf]  ;;  %v5296_v26 = vld [vmem:[#allocation2 + $0x7f0] sm:$0xf0] }
 0x162   :  { %3241 = vmatpush.bf16.msra.mxu0 %v3491_v34  ;;  %v4350_v34 = vld [vmem:[#allocation2 + $0x718] sm:$0xf]  ;;  %v4450_v25 = vld [vmem:[#allocation2 + $0x7e0] sm:$0xf] }
 0x163   :  { %3255 = vmatpush.bf16.msra.mxu1 %v3651_v37  ;;  %v5271_v37 = vld [vmem:[#allocation2 + $0x728] sm:$0xf0] }
 0x164   :  { %3269 = vmatpush.bf16.msra.mxu2 %v3811_v38  ;;  %v2979_v38 = vpop.f32.mrf.mxu1  ;;  %v4351_v47 = vor.u32 %v5271_v37, %v4350_v34  ;;  %v5251_v34 = vld [vmem:[#allocation2 + $0x688] sm:$0xf0] }
 0x165   :  { %3283 = vmatpush.bf16.msra.mxu3 %v3971_v46  ;;  %v4670_v46 = vld [vmem:[#allocation2 + $0x998] sm:$0xf] }
 0x166   :  { %3242 = vmatpush.bf16.msra.mxu0 %v3471_v49  ;;  %v5226_v49 = vld [vmem:[#allocation2 + $0x5c0] sm:$0xf0] }
 0x167   :  { %3256 = vmatpush.bf16.msra.mxu1 %v3631_v53  ;;  %v5683_v53 = vld [vmem:[#allocation4] sm:$0x1f]  ;;  %v4171_v56 = vor.u32 %v5226_v49, %v4170_v50  ;;  %v4090_v50 = vld [vmem:[#allocation2 + $0x510] sm:$0xf] }
 0x168   :  { %3270 = vmatpush.bf16.msra.mxu2 %v3791_v54  ;;  %v4490_v54 = vld [vmem:[#allocation2 + $0x830] sm:$0xf] }
 0x169   :  { %3284 = vmatpush.bf16.msra.mxu3 %v3951_v58  ;;  %v4331_v58 = vor.u32 %v5266_v52, %v4330_v51  ;;  %v4250_v49 = vld [vmem:[#allocation2 + $0x650] sm:$0xf]  ;;  %v3009_v63 = vpop.f32.mrf.mxu3 }
 0x16a   :  { %3243 = vmatpush.bf16.msra.mxu0 %v3451_v4  ;;  %v4651_v4 = vor.u32 %v5346_v55, %v4650_v18  ;;  %v3021_v51 = vpop.f32.mrf.mxu0 }
 0x16b   :  { %3257 = vmatpush.bf16.msra.mxu1 %v3611_v9  ;;  %v4630_v9 = vld [vmem:[#allocation2 + $0x948] sm:$0xf] }
 0x16c   :  { %3271 = vmatpush.bf16.msra.mxu2 %v3771_v1  ;;  %v5341_v1 = vld [vmem:[#allocation2 + $0x958] sm:$0xf0]  ;;  %v5688_v10 = vpop.f32.mrf.mxu1 }
 0x16d   :  { %3285 = vmatpush.bf16.msra.mxu3 %v3931_v20  ;;  %3244 = vmatmul.bf16.vlgmr.msra.gmra.mxu0 %v5538_v60  ;;  %v538_v60 = vperm.slane %v5683_v53, 2  ;;  %v5216_v20 = vld [vmem:[#allocation2 + $0x570] sm:$0xf0] }
 0x16e   :  { %3292 = vmatpush.bf16.msrb.mxu0 %v4231_v13  ;;  %3258 = vmatmul.bf16.vlgmr.msra.gmra.mxu1 %v5553_v8  ;;  %v5306_v8 = vld [vmem:[#allocation2 + $0x840] sm:$0xf0] }
 0x16f   :  { %3306 = vmatpush.bf16.msrb.mxu1 %v4391_v15  ;;  %3272 = vmatmul.bf16.vlgmr.msra.gmra.mxu2 %v5543_v2  ;;  %v4671_v2 = vor.u32 %v5351_v35, %v4670_v46  ;;  %v4491_v61 = vor.u32 %v5306_v8, %v4490_v54  ;;  %v2966_v3 = vadd.f32 %v2965_v30, %v538_v60  ;;  %v4130_v15 = vld [vmem:[#allocation2 + $0x560] sm:$0xf]  ;;  %v4590_v46 = vld [vmem:[#allocation2 + $0x8f8] sm:$0xf]  ;;  %v5331_v35 = vld [vmem:[#allocation2 + $0x908] sm:$0xf0] }
 0x170   :  { %3320 = vmatpush.bf16.msrb.mxu2 %v4551_v19  ;;  %3286 = vmatmul.bf16.vlgmr.msra.gmra.mxu3 %v5561_v14  ;;  %v4310_v14 = vld [vmem:[#allocation2 + $0x6c8] sm:$0xf]  ;;  %v4471_v19 = vor.u32 %v5301_v5, %v4470_v43  ;;  %v4451_v30 = vor.u32 %v5296_v26, %v4450_v25  ;;  %v4410_v54 = vld [vmem:[#allocation2 + $0x790] sm:$0xf]  ;;  %v5286_v8 = vld [vmem:[#allocation2 + $0x7a0] sm:$0xf0]  ;;  %v2968_v18 = vadd.f32 %v2967_v7, %v538_v60 }
 0x171   :  { %3334 = vmatpush.bf16.msrb.mxu3 %v4711_v24  ;;  %v4311_v13 = vor.u32 %v5261_v0, %v4310_v14  ;;  %v2980_v23 = vadd.f32 %v2979_v38, %v2966_v3  ;;  %v4631_v24 = vor.u32 %v5341_v1, %v4630_v9  ;;  %v4430_v38 = vld [vmem:[#allocation2 + $0x7b8] sm:$0xf]  ;;  %v5441_v14 = vld [vmem:[#allocation2 + $0xc78] sm:$0xf0]  ;;  %v4570_v0 = vld [vmem:[#allocation2 + $0x8d0] sm:$0xf]  ;;  %v4411_v5 = vor.u32 %v5286_v8, %v4410_v54 }
 0x172   :  { %3293 = vmatpush.bf16.msrb.mxu0 %v4211_v62  ;;  %v4131_v62 = vor.u32 %v5216_v20, %v4130_v15  ;;  %v4431_v52 = vor.u32 %v5291_v42, %v4430_v38  ;;  %v5326_v3 = vld [vmem:[#allocation2 + $0x8e0] sm:$0xf0]  ;;  %v2982_v60 = vadd.f32 %v5688_v10, %v2968_v18  ;;  %v5396_v15 = vld [vmem:[#allocation2 + $0xb10] sm:$0xf0]  ;;  %v3049_v20 = vpop.f32.mrf.mxu2  ;;  %v4830_v10 = vld [vmem:[#allocation2 + $0xad8] sm:$0xf]  ;;  %v3023_v26 = vpop.f32.mrf.mxu0 }
 0x173   :  { %3307 = vmatpush.bf16.msrb.mxu1 %v4371_v17  ;;  %v4291_v17 = vor.u32 %v5256_v22, %v4290_v11  ;;  %v2994_v37 = vadd.f32 %v2993_v59, %v2980_v23  ;;  %v5401_v59 = vld [vmem:[#allocation2 + $0xb38] sm:$0xf0]  ;;  %v5391_v25 = vld [vmem:[#allocation2 + $0xae8] sm:$0xf0]  ;;  %v4770_v8 = vld [vmem:[#allocation2 + $0xa60] sm:$0xf] }
 0x174   :  { %3321 = vmatpush.bf16.msrb.mxu2 %v4531_v32  ;;  %v5211_v32 = vld [vmem:[#allocation2 + $0x548] sm:$0xf0]  ;;  %v4871_v9 = vor.u32 %v5401_v59, %v4870_v57  ;;  %v2996_v22 = vadd.f32 %v2995_v45, %v2982_v60  ;;  %v5376_v18 = vld [vmem:[#allocation2 + $0xa70] sm:$0xf0] }
 0x175   :  { %3335 = vmatpush.bf16.msrb.mxu3 %v4691_v41  ;;  %v4611_v41 = vor.u32 %v5336_v6, %v4610_v28  ;;  %v3008_v55 = vadd.f32 %v3007_v16, %v2994_v37  ;;  %v5010_v16 = vld [vmem:[#allocation2 + $0xc40] sm:$0xf]  ;;  %v4990_v28 = vld [vmem:[#allocation2 + $0xc18] sm:$0xf]  ;;  %v5431_v6 = vld [vmem:[#allocation2 + $0xc28] sm:$0xf0]  ;;  %v4771_v57 = vor.u32 %v5376_v18, %v4770_v8 }
 0x176   :  { %3294 = vmatpush.bf16.msrb.mxu0 %v4191_v21  ;;  %v4111_v21 = vor.u32 %v5211_v32, %v4110_v29  ;;  %v4831_v29 = vor.u32 %v5391_v25, %v4830_v10  ;;  %v5386_v37 = vld [vmem:[#allocation2 + $0xac0] sm:$0xf0] }
 0x177   :  { %3308 = vmatpush.bf16.msrb.mxu1 %v4351_v47  ;;  %v4271_v47 = vor.u32 %v5251_v34, %v4270_v33  ;;  %v3022_v7 = vadd.f32 %v3021_v51, %v3008_v55  ;;  %v4991_v33 = vor.u32 %v5431_v6, %v4990_v28  ;;  %v4810_v34 = vld [vmem:[#allocation2 + $0xab0] sm:$0xf] }
 0x178   :  { %3322 = vmatpush.bf16.msrb.mxu2 %v4511_v39  ;;  %v5206_v39 = vld [vmem:[#allocation2 + $0x520] sm:$0xf0] }
 0x179   :  { %3336 = vmatpush.bf16.msrb.mxu3 %v4671_v2  ;;  %v5246_v2 = vld [vmem:[#allocation2 + $0x660] sm:$0xf0] }
 0x17a   :  { %3295 = vmatpush.bf16.msrb.mxu0 %v4171_v56  ;;  %v3035_v56 = vpop.f32.mrf.mxu1  ;;  %v4251_v43 = vor.u32 %v5246_v2, %v4250_v49 }
 0x17b   :  { %3309 = vmatpush.bf16.msrb.mxu1 %v4331_v58  ;;  %v4591_v58 = vor.u32 %v5331_v35, %v4590_v46  ;;  %v3036_v23 = vadd.f32 %v3035_v56, %v3022_v7  ;;  %v5381_v46 = vld [vmem:[#allocation2 + $0xa98] sm:$0xf0]  ;;  %v3051_v35 = vpop.f32.mrf.mxu2  ;;  %v4930_v56 = vld [vmem:[#allocation2 + $0xba0] sm:$0xf] }
 0x17c   :  { %3323 = vmatpush.bf16.msrb.mxu2 %v4491_v61  ;;  %v5030_v61 = vld [vmem:[#allocation2 + $0xc68] sm:$0xf] }
 0x17d   :  { %3337 = vmatpush.bf16.msrb.mxu3 %v4651_v4  ;;  %v4091_v4 = vor.u32 %v5206_v39, %v4090_v50  ;;  %v5031_v1 = vor.u32 %v5441_v14, %v5030_v61  ;;  %v3050_v32 = vadd.f32 %v3049_v20, %v3036_v23  ;;  %v5371_v14 = vld [vmem:[#allocation2 + $0xa48] sm:$0xf0] }
 0x17e   :  { %3296 = vmatpush.bf16.msrb.mxu0 %v4151_v12  ;;  %v4571_v12 = vor.u32 %v5326_v3, %v4570_v0  ;;  %v4910_v3 = vld [vmem:[#allocation2 + $0xb78] sm:$0xf] }
 0x17f   :  { %3310 = vmatpush.bf16.msrb.mxu1 %v4311_v13  ;;  %v4850_v13 = vld [vmem:[#allocation2 + $0xb00] sm:$0xf] }
 0x180   :  { %3324 = vmatpush.bf16.msrb.mxu2 %v4471_v19  ;;  %v5436_v19 = vld [vmem:[#allocation2 + $0xc50] sm:$0xf0]  ;;  %v4851_v11 = vor.u32 %v5396_v15, %v4850_v13  ;;  %v4890_v13 = vld [vmem:[#allocation2 + $0xb50] sm:$0xf]  ;;  %v5406_v15 = vld [vmem:[#allocation2 + $0xb60] sm:$0xf0] }
 0x181   :  { %3338 = vmatpush.bf16.msrb.mxu3 %v4631_v24  ;;  %v5011_v24 = vor.u32 %v5436_v19, %v5010_v16  ;;  %v4891_v19 = vor.u32 %v5406_v15, %v4890_v13 }
 0x182   :  { %3297 = vmatpush.bf16.msrb.mxu0 %v4131_v62  ;;  %v3037_v62 = vpop.f32.mrf.mxu1 }
 0x183   :  { %3311 = vmatpush.bf16.msrb.mxu1 %v4291_v17  ;;  %v3063_v17 = vpop.f32.mrf.mxu3 }
 0x184   :  { %3325 = vmatpush.bf16.msrb.mxu2 %v4451_v30  ;;  %v3010_v30 = vadd.f32 %v3009_v63, %v2996_v22  ;;  %v3064_v42 = vadd.f32 %v3063_v17, %v3050_v32  ;;  %v4750_v63 = vld [vmem:[#allocation2 + $0xa38] sm:$0xf]  ;;  %v539_v22 = vperm.slane %v5683_v53, 3 }
 0x185   :  { %3339 = vmatpush.bf16.msrb.mxu3 %v4611_v41  ;;  %v4970_v41 = vld [vmem:[#allocation2 + $0xbf0] sm:$0xf] }
 0x186   :  { %3298 = vmatpush.bf16.msrb.mxu0 %v4111_v21  ;;  %v3024_v38 = vadd.f32 %v3023_v26, %v3010_v30  ;;  %v4950_v21 = vld [vmem:[#allocation2 + $0xbc8] sm:$0xf] }
 0x187   :  { %3312 = vmatpush.bf16.msrb.mxu1 %v4271_v47  ;;  %v5421_v47 = vld [vmem:[#allocation2 + $0xbd8] sm:$0xf0] }
 0x188   :  { %3326 = vmatpush.bf16.msrb.mxu2 %v4431_v52  ;;  %v3038_v50 = vadd.f32 %v3037_v62, %v3024_v38  ;;  %v4951_v54 = vor.u32 %v5421_v47, %v4950_v21 }
 0x189   :  { %3340 = vmatpush.bf16.msrb.mxu3 %v4591_v58  ;;  %v5416_v58 = vld [vmem:[#allocation2 + $0xbb0] sm:$0xf0] }
 0x18a   :  { %3299 = vmatpush.bf16.msrb.mxu0 %v4091_v4  ;;  %v3052_v52 = vadd.f32 %v3051_v35, %v3038_v50  ;;  %v4931_v61 = vor.u32 %v5416_v58, %v4930_v56  ;;  %v5411_v4 = vld [vmem:[#allocation2 + $0xb88] sm:$0xf0]  ;;  %v540_v58 = vperm.slane %v5683_v53, 4 }
 0x18b   :  { %3313 = vmatpush.bf16.msrb.mxu1 %v4251_v43  ;;  %v3091_v49 = vpop.f32.mrf.mxu1  ;;  %v3065_v55 = vpop.f32.mrf.mxu3  ;;  %v4911_v7 = vor.u32 %v5411_v4, %v4910_v3 }
 0x18c   :  { %3327 = vmatpush.bf16.msrb.mxu2 %v4411_v5  ;;  %v3066_v59 = vadd.f32 %v3065_v55, %v3052_v52 }
 0x18d   :  { %3341 = vmatpush.bf16.msrb.mxu3 %v4571_v12  ;;  %3300 = vmatmul.bf16.vlgmr.msrb.gmra.mxu0 %v5586_v36  ;;  %v5426_v36 = vld [vmem:[#allocation2 + $0xc00] sm:$0xf0] }
 0x18e   :  { %3348 = vmatpush.bf16.msra.mxu0 %v4871_v9  ;;  %3314 = vmatmul.bf16.vlgmr.msrb.gmra.mxu1 %v5593_v44  ;;  %v4811_v44 = vor.u32 %v5386_v37, %v4810_v34  ;;  %v4971_v45 = vor.u32 %v5426_v36, %v4970_v41  ;;  %v4751_v9 = vor.u32 %v5371_v14, %v4750_v63  ;;  %v5366_v12 = vld [vmem:[#allocation2 + $0xa20] sm:$0xf0] }
 0x18f   :  { %3362 = vmatpush.bf16.msra.mxu1 %v5031_v1  ;;  %3328 = vmatmul.bf16.vlgmr.msrb.gmra.mxu2 %v5591_v40  ;;  %v4790_v40 = vld [vmem:[#allocation2 + $0xa88] sm:$0xf]  ;;  %v4730_v1 = vld [vmem:[#allocation2 + $0xa10] sm:$0xf] }
 0x190   :  { %3342 = vmatmul.bf16.vlgmr.msrb.gmra.mxu3 %v5595_v48  ;;  %v3077_v48 = vpop.f32.mrf.mxu0  ;;  %v4791_v51 = vor.u32 %v5381_v46, %v4790_v40  ;;  %v4731_v16 = vor.u32 %v5366_v12, %v4730_v1 }
 0x191   :  { %v3078_v39 = vadd.f32 %v3077_v48, %v3064_v42 }
 0x192   :  { %3349 = vmatpush.bf16.msra.mxu0 %v4851_v11  ;;  %v3105_v20 = vpop.f32.mrf.mxu2 }
 0x193   :  { %3363 = vmatpush.bf16.msra.mxu1 %v5011_v24  ;;  %v3092_v2 = vadd.f32 %v3091_v49, %v3078_v39  ;;  %v3093_v5 = vpop.f32.mrf.mxu1  ;;  %v3119_v11 = vpop.f32.mrf.mxu3  ;;  %v3106_v23 = vadd.f32 %v3105_v20, %v539_v22 }
 0x195   :  { %3378 = vst [vmem:[%s5722_s3 + $0x10] sm:$0xff] %v3092_v2  ;;  %v3120_v26 = vadd.f32 %v3119_v11, %v3106_v23 }
 0x196   :  { %3350 = vmatpush.bf16.msra.mxu0 %v4831_v29 }
 0x197   :  { %3364 = vmatpush.bf16.msra.mxu1 %v4991_v33 }
 0x198   :  { %v3079_v0 = vpop.f32.mrf.mxu0 }
 0x199   :  { %v3080_v43 = vadd.f32 %v3079_v0, %v3066_v59 }
 0x19a   :  { %3351 = vmatpush.bf16.msra.mxu0 %v4811_v44  ;;  %v3107_v24 = vpop.f32.mrf.mxu2 }
 0x19b   :  { %3365 = vmatpush.bf16.msra.mxu1 %v4971_v45  ;;  %v3094_v60 = vadd.f32 %v3093_v5, %v3080_v43  ;;  %v3121_v10 = vpop.f32.mrf.mxu3  ;;  %v3108_v17 = vadd.f32 %v3107_v24, %v539_v22 }
 0x19d   :  { %3383 = vst [vmem:[%s5722_s3 + $0x38] sm:$0xff] %v3094_v60 }
 0x19e   :  { %3352 = vmatpush.bf16.msra.mxu0 %v4791_v51 }
 0x19f   :  { %3366 = vmatpush.bf16.msra.mxu1 %v4951_v54 }
 0x1a2   :  { %3353 = vmatpush.bf16.msra.mxu0 %v4771_v57 }
 0x1a3   :  { %3367 = vmatpush.bf16.msra.mxu1 %v4931_v61 }
 0x1a6   :  { %3354 = vmatpush.bf16.msra.mxu0 %v4751_v9 }
 0x1a7   :  { %3368 = vmatpush.bf16.msra.mxu1 %v4911_v7 }
 0x1aa   :  { %3355 = vmatpush.bf16.msra.mxu0 %v4731_v16  ;;  %v3133_v25 = vpop.f32.mrf.mxu0 }
 0x1ab   :  { %3369 = vmatpush.bf16.msra.mxu1 %v4891_v19  ;;  %v3147_v28 = vpop.f32.mrf.mxu1  ;;  %v3134_v6 = vadd.f32 %v3133_v25, %v3120_v26 }
 0x1ad   :  { %3356 = vmatmul.bf16.vlgmr.msra.gmra.mxu0 %v5613_v27  ;;  %v3148_v30 = vadd.f32 %v3147_v28, %v3134_v6  ;;  %v3122_v27 = vadd.f32 %v3121_v10, %v3108_v17 }
 0x1ae   :  { %3370 = vmatmul.bf16.vlgmr.msra.gmra.mxu1 %v5615_v31 }
 0x1b2   :  { %v3161_v62 = vpop.f32.mrf.mxu2  ;;  %v3135_v32 = vpop.f32.mrf.mxu0 }
 0x1b3   :  { %v3175_v29 = vpop.f32.mrf.mxu3  ;;  %v3149_v33 = vpop.f32.mrf.mxu1  ;;  %v3162_v34 = vadd.f32 %v3161_v62, %v3148_v30  ;;  %v3136_v31 = vadd.f32 %v3135_v32, %v3122_v27 }
 0x1b5   :  { %v3176_v37 = vadd.f32 %v3175_v29, %v3162_v34  ;;  %v3150_v38 = vadd.f32 %v3149_v33, %v3136_v31 }
 0x1ba   :  { %v3163_v41 = vpop.f32.mrf.mxu2 }
 0x1bb   :  { %v3177_v36 = vpop.f32.mrf.mxu3  ;;  %v3164_v40 = vadd.f32 %v3163_v41, %v3150_v38 }
 0x1bd   :  { %v3178_v48 = vadd.f32 %v3177_v36, %v3164_v40 }
 0x1ca   :  { %v3189_v44 = vpop.f32.mrf.mxu0 }
 0x1cb   :  { %v3190_v42 = vadd.f32 %v3189_v44, %v3176_v37  ;;  %v3203_v45 = vpop.f32.mrf.mxu1 }
 0x1cd   :  { %v3204_v46 = vadd.f32 %v3203_v45, %v3190_v42 }
 0x1d2   :  { %v3217_v35 = vpop.f32.mrf.mxu2  ;;  %v3191_v47 = vpop.f32.mrf.mxu0 }
 0x1d3   :  { %v3218_v21 = vadd.f32 %v3217_v35, %v3204_v46  ;;  %v3231_v50 = vpop.f32.mrf.mxu3  ;;  %v3192_v39 = vadd.f32 %v3191_v47, %v3178_v48  ;;  %v3205_v51 = vpop.f32.mrf.mxu1 }
 0x1d5   :  { %v3232_v49 = vadd.f32 %v3231_v50, %v3218_v21  ;;  %v3206_v52 = vadd.f32 %v3205_v51, %v3192_v39 }
 0x1d7   :  { %3379 = vst [vmem:[%s5722_s3 + $0x18] sm:$0xff] %v3232_v49 }
 0x1da   :  { %v3219_v2 = vpop.f32.mrf.mxu2 }
 0x1db   :  { %v3220_v54 = vadd.f32 %v3219_v2, %v3206_v52  ;;  %v3233_v8 = vpop.f32.mrf.mxu3 }
 0x1dd   :  { %v3234_v18 = vadd.f32 %v3233_v8, %v3220_v54 }
 0x1df   :  { %3384 = vst [vmem:[%s5722_s3 + $0x40] sm:$0xff] %v3234_v18 }
 0x1ea   :  { %v3245_v55 = vpop.f32.mrf.mxu0 }
 0x1eb   :  { %v3259_v56 = vpop.f32.mrf.mxu1  ;;  %v3246_v59 = vadd.f32 %v3245_v55, %v540_v58 }
 0x1ed   :  { %v3260_v0 = vadd.f32 %v3259_v56, %v3246_v59 }
 0x1f2   :  { %v3273_v57 = vpop.f32.mrf.mxu2  ;;  %v3247_v61 = vpop.f32.mrf.mxu0 }
 0x1f3   :  { %v3261_v63 = vpop.f32.mrf.mxu1  ;;  %v3287_v14 = vpop.f32.mrf.mxu3  ;;  %v3274_v3 = vadd.f32 %v3273_v57, %v3260_v0  ;;  %v3248_v5 = vadd.f32 %v3247_v61, %v540_v58 }
 0x1f5   :  { %v3288_v9 = vadd.f32 %v3287_v14, %v3274_v3  ;;  %v3262_v1 = vadd.f32 %v3261_v63, %v3248_v5 }
 0x1fa   :  { %v3275_v4 = vpop.f32.mrf.mxu2 }
 0x1fb   :  { %v3289_v7 = vpop.f32.mrf.mxu3  ;;  %v3276_v15 = vadd.f32 %v3275_v4, %v3262_v1 }
 0x1fd   :  { %v3290_v11 = vadd.f32 %v3289_v7, %v3276_v15 }
 0x20a   :  { %v3301_v43 = vpop.f32.mrf.mxu0 }
 0x20b   :  { %v3315_v60 = vpop.f32.mrf.mxu1  ;;  %v3302_v12 = vadd.f32 %v3301_v43, %v3288_v9 }
 0x20d   :  { %v3316_v16 = vadd.f32 %v3315_v60, %v3302_v12 }
 0x212   :  { %v3329_v13 = vpop.f32.mrf.mxu2  ;;  %v3303_v19 = vpop.f32.mrf.mxu0 }
 0x213   :  { %v3317_v53 = vpop.f32.mrf.mxu1  ;;  %v3343_v20 = vpop.f32.mrf.mxu3  ;;  %v3330_v22 = vadd.f32 %v3329_v13, %v3316_v16  ;;  %v3304_v23 = vadd.f32 %v3303_v19, %v3290_v11 }
 0x215   :  { %v3344_v24 = vadd.f32 %v3343_v20, %v3330_v22  ;;  %v3318_v26 = vadd.f32 %v3317_v53, %v3304_v23 }
 0x21a   :  { %v3331_v10 = vpop.f32.mrf.mxu2 }
 0x21b   :  { %v3332_v62 = vadd.f32 %v3331_v10, %v3318_v26  ;;  %v3345_v29 = vpop.f32.mrf.mxu3 }
 0x21d   :  { %v3346_v30 = vadd.f32 %v3345_v29, %v3332_v62 }
 0x22a   :  { %v3357_v25 = vpop.f32.mrf.mxu0 }
 0x22b   :  { %v3358_v28 = vadd.f32 %v3357_v25, %v3344_v24  ;;  %v3371_v6 = vpop.f32.mrf.mxu1 }
 0x22d   :  { %v3372_v17 = vadd.f32 %v3371_v6, %v3358_v28 }
 0x22f   :  { %3380 = vst [vmem:[%s5722_s3 + $0x20] sm:$0xff] %v3372_v17 }
 0x232   :  { %v3359_v32 = vpop.f32.mrf.mxu0 }
 0x233   :  { %v3360_v33 = vadd.f32 %v3359_v32, %v3346_v30  ;;  %v3373_v27 = vpop.f32.mrf.mxu1 }
 0x235   :  { %v3374_v34 = vadd.f32 %v3373_v27, %v3360_v33 }
 0x237   :  { %3385 = vst [vmem:[%s5722_s3 + $0x48] sm:$0xff] %v3374_v34 }
 0x238   :  { %3390 = vsyncpa [#allocation3], 1 }
 0x239   :  { %3391 = vsyncpa [#allocation5], 1 }

</bundles_post_ra>
